<compile_context>
chip_gen: v6e
topology: v6e:2x2x1
jax: 0.10.0
libtpu: 0.0.40
codegen_flags: <defaults>
</compile_context>

<pallas_src>
import functools

import jax
import jax.numpy as jnp
from jax import lax
from jax.experimental import pallas as pl
from jax.experimental.pallas import tpu as pltpu

LANE = 128     # each GRU gate is padded to one 128-lane slice
SUBLANE = 8    # batch is padded to a whole sublane group


def gru_fused_kernel(idx_ref, embgi_ref, whh_ref, bhhn_ref, wlin_ref, blin_ref,
                     out_ref, *, seq_len, batch_pad, hidden_pad, vocab_pad):
    """Embedding gather + full GRU recurrence + Linear + sigmoid, one grid step.

    idx_ref   : (T*Bp, 1) int32  token ids, time-major, batch padded to Bp
    embgi_ref : (Vp, 3*Hp) f32   E @ W_ih^T + b_ih + b_hh[r,z], gate-padded
    whh_ref   : (Hp, 3*Hp) bf16  W_hh^T, row- and gate-padded
    bhhn_ref  : (1, 3*Hp)  f32   b_hh, nonzero only on the n-gate lanes
    wlin_ref  : (Hp, 128)  f32   final linear weight in column 0
    blin_ref  : (1, 128)   f32   final linear bias in lane 0
    out_ref   : (Bp, 128)  f32   sigmoid(logit) in lane 0 (lane-dense store)
    """
    T, Bp, Hp, Vp = seq_len, batch_pad, hidden_pad, vocab_pad
    TB = T * Bp

    # Fused embedding lookup + input projection: one-hot MXU matmul against the
    # pre-projected table (biases already folded in). Not on the serial path.
    idx = idx_ref[...]                                        # (TB, 1) int32
    cols = lax.broadcasted_iota(jnp.int32, (TB, Vp), 1)
    onehot = (idx == cols).astype(jnp.float32)                # (TB, Vp)
    gi_all = jnp.dot(onehot, embgi_ref[...],
                     preferred_element_type=jnp.float32)      # (TB, 3*Hp)

    whh = whh_ref[...]                                        # (Hp, 3*Hp) bf16
    bhh_n = bhhn_ref[...]                                     # (1, 3*Hp)

    h = jnp.zeros((Bp, Hp), jnp.float32)
    # T is small and static -> full unroll; Bp == 8 makes every per-timestep
    # slice a whole sublane group and every gate slice a whole 128-lane vreg.
    for t in range(T):
        gi = gi_all[t * Bp:(t + 1) * Bp, :]                   # (Bp, 3*Hp)
        # Serial dependence: bf16 MXU operands, f32 accumulation.
        gh = jnp.dot(h.astype(jnp.bfloat16), whh,
                     preferred_element_type=jnp.float32) + bhh_n
        i_r, i_z, i_n = gi[:, :Hp], gi[:, Hp:2 * Hp], gi[:, 2 * Hp:]
        h_r, h_z, h_n = gh[:, :Hp], gh[:, Hp:2 * Hp], gh[:, 2 * Hp:]
        r = jax.nn.sigmoid(i_r + h_r)        # b_hr / b_hz already in gi
        z = jax.nn.sigmoid(i_z + h_z)
        n = jnp.tanh(i_n + r * h_n)          # gh_n carries b_hn
        h = n + z * (h - n)                  # == (1 - z) * n + z * h
        # Padded lanes provably stay exactly 0 through the recurrence.

    # Fused Linear(H, 1) + sigmoid: logit in lane 0 of a lane-dense slab.
    logits = jnp.dot(h, wlin_ref[...], preferred_element_type=jnp.float32)
    out_ref[...] = jax.nn.sigmoid(logits + blin_ref[...])


def prepare_params(params):
    """One-time weight massaging (call once; NOT per forward)."""
    emb = params["embed"]            # (V, E)
    w_ih_t = params["w_ih_t"]        # (E, 3H)
    w_hh_t = params["w_hh_t"]        # (H, 3H)
    b_ih = params["b_ih"]            # (1, 3H)
    b_hh = params["b_hh"]            # (1, 3H)
    w_lin_t = params["w_lin_t"]      # (H, 1)
    b_lin = params["b_lin"]          # (1, 1)

    V, _ = emb.shape
    H = w_hh_t.shape[0]
    Hp = LANE
    assert H <= Hp, "hidden_dim must fit in one 128-lane gate slice"
    Vp = max(SUBLANE, pl.cdiv(V, SUBLANE) * SUBLANE)

    def pad_gates(w):                # (K, 3H) -> (K, 3*Hp), one gate per 128 lanes
        return jnp.concatenate(
            [jnp.pad(w[:, g * H:(g + 1) * H], ((0, 0), (0, Hp - H)))
             for g in range(3)], axis=1)

    wih_pg = pad_gates(w_ih_t)                                   # (E, 3*Hp)
    bih_pg = pad_gates(b_ih)                                     # (1, 3*Hp)
    bhh_pg = pad_gates(b_hh)                                     # (1, 3*Hp)
    zero_gate = jnp.zeros((1, Hp), jnp.float32)
    bhh_rz = jnp.concatenate([bhh_pg[:, :2 * Hp], zero_gate], axis=1)
    bhh_n = jnp.concatenate([zero_gate, zero_gate, bhh_pg[:, 2 * Hp:]], axis=1)

    # Pre-projected embedding table: row v = E[v] @ W_ih^T + b_ih + b_hh[r,z].
    embed_gi = emb @ wih_pg + bih_pg + bhh_rz                    # (V, 3*Hp)
    embed_gi = jnp.pad(embed_gi, ((0, Vp - V), (0, 0)))          # (Vp, 3*Hp)

    whh_pg = jnp.pad(pad_gates(w_hh_t), ((0, Hp - H), (0, 0)))   # (Hp, 3*Hp)
    wlin_pad = jnp.pad(w_lin_t, ((0, Hp - H), (0, LANE - 1)))    # (Hp, 128)
    blin_pad = jnp.pad(b_lin, ((0, 0), (0, LANE - 1)))           # (1, 128)

    return {
        "embed_gi": embed_gi.astype(jnp.float32),
        "whh": whh_pg.astype(jnp.bfloat16),   # bf16 operands on the serial path
        "bhh_n": bhh_n.astype(jnp.float32),
        "wlin": wlin_pad.astype(jnp.float32),
        "blin": blin_pad.astype(jnp.float32),
    }


@jax.jit
def rnn_forward(x_idx, lengths, prep):
    """x_idx: (B, T) int32 token ids. Returns (B, 1) float32 in [0, 1]."""
    del lengths  # unused in the reference forward (no pack_padded_sequence)
    B, T = x_idx.shape
    Vp, gate_lanes = prep["embed_gi"].shape
    Hp = gate_lanes // 3
    Bp = max(SUBLANE, pl.cdiv(B, SUBLANE) * SUBLANE)

    # Time-major ids, batch padded to a full sublane group (pad token id = 0;
    # padded rows are discarded below).
    idx = jnp.pad(x_idx.T.astype(jnp.int32), ((0, 0), (0, Bp - B)))  # (T, Bp)
    idx = idx.reshape(T * Bp, 1)

    kernel = functools.partial(gru_fused_kernel, seq_len=T, batch_pad=Bp,
                               hidden_pad=Hp, vocab_pad=Vp)

    out = pl.pallas_call(
        kernel,
        out_shape=jax.ShapeDtypeStruct((Bp, LANE), jnp.float32),
        grid_spec=pltpu.PrefetchScalarGridSpec(
            num_scalar_prefetch=0,
            grid=(1,),   # entire recurrence lives in one grid step
            in_specs=[
                pl.BlockSpec((T * Bp, 1), lambda i: (0, 0)),      # token ids
                pl.BlockSpec((Vp, 3 * Hp), lambda i: (0, 0)),     # embed @ W_ih^T
                pl.BlockSpec((Hp, 3 * Hp), lambda i: (0, 0)),     # W_hh^T (bf16)
                pl.BlockSpec((1, 3 * Hp), lambda i: (0, 0)),      # b_hh (n gate)
                pl.BlockSpec((Hp, LANE), lambda i: (0, 0)),       # w_lin padded
                pl.BlockSpec((1, LANE), lambda i: (0, 0)),        # b_lin padded
            ],
            out_specs=pl.BlockSpec((Bp, LANE), lambda i: (0, 0)), # lane-dense out
        ),
        compiler_params=pltpu.CompilerParams(
            dimension_semantics=("arbitrary",)),
    )(idx, prep["embed_gi"], prep["whh"], prep["bhh_n"],
      prep["wlin"], prep["blin"])

    return out[:B, :1]


def rnn_forward_ref(x_idx, lengths, params):
    """Pure-JAX f32 reference (mirrors torch.nn.GRU semantics) for validation."""
    del lengths
    emb = params["embed"]
    x_emb = jnp.take(emb, x_idx, axis=0)          # (B, T, E)
    x_seq = jnp.transpose(x_emb, (1, 0, 2))       # (T, B, E)
    B = x_idx.shape[0]
    H = params["w_hh_t"].shape[0]

    def step(h, x_t):
        gi = x_t @ params["w_ih_t"] + params["b_ih"]
        gh = h @ params["w_hh_t"] + params["b_hh"]
        i_r, i_z, i_n = jnp.split(gi, 3, axis=-1)
        h_r, h_z, h_n = jnp.split(gh, 3, axis=-1)
        r = jax.nn.sigmoid(i_r + h_r)
        z = jax.nn.sigmoid(i_z + h_z)
        n = jnp.tanh(i_n + r * h_n)
        return (1.0 - z) * n + z * h, None

    h0 = jnp.zeros((B, H), jnp.float32)
    h_last, _ = lax.scan(step, h0, x_seq)
    logits = h_last @ params["w_lin_t"] + params["b_lin"]
    return jax.nn.sigmoid(logits)


def init_params(key, vocab_size, embedding_dim, hidden_dim):
    ks = jax.random.split(key, 7)
    scale = 1.0 / jnp.sqrt(hidden_dim)
    return {
        "embed": jax.random.normal(ks[0], (vocab_size, embedding_dim), jnp.float32),
        # stored transposed relative to PyTorch's (3H, E)/(3H, H)
        "w_ih_t": jax.random.uniform(ks[1], (embedding_dim, 3 * hidden_dim),
                                     jnp.float32, -scale, scale),
        "w_hh_t": jax.random.uniform(ks[2], (hidden_dim, 3 * hidden_dim),
                                     jnp.float32, -scale, scale),
        "b_ih": jax.random.uniform(ks[3], (1, 3 * hidden_dim),
                                   jnp.float32, -scale, scale),
        "b_hh": jax.random.uniform(ks[4], (1, 3 * hidden_dim),
                                   jnp.float32, -scale, scale),
        "w_lin_t": jax.random.uniform(ks[5], (hidden_dim, 1),
                                      jnp.float32, -scale, scale),
        "b_lin": jax.random.uniform(ks[6], (1, 1), jnp.float32, -scale, scale),
    }


if __name__ == "__main__":
    VOCAB = 50
    EMBED_DIM = 32
    HIDDEN_DIM = 32   # must equal EMBED_DIM for the module's Linear to be valid
    BATCH = 2
    SEQ = 8
    assert EMBED_DIM == HIDDEN_DIM

    key = jax.random.PRNGKey(0)
    k_param, k_tok = jax.random.split(key, 2)

    params = init_params(k_param, VOCAB, EMBED_DIM, HIDDEN_DIM)
    prep = prepare_params(params)   # one-time padding / folding, NOT per call
    x_idx = jax.random.randint(k_tok, (BATCH, SEQ), 0, VOCAB, dtype=jnp.int32)
    lengths = jnp.full((BATCH,), SEQ, dtype=jnp.int32)  # unused, kept for parity

    out = rnn_forward(x_idx, lengths, prep)
    out = jax.block_until_ready(out)

    ref = rnn_forward_ref(x_idx, lengths, params)
    assert out.shape == (BATCH, 1)
    # bf16 MXU operands on the recurrent matmul -> loosened vs f32 reference.
    assert jnp.allclose(out, ref, atol=1e-2, rtol=1e-2), (out, ref)

    print("KERNEL_OK")
</pallas_src>

<mosaic_0001>
module attributes {stable_mosaic.version = 11 : i64} {
  func.func @gru_fused_kernel(%arg0: i32, %arg1: memref<64x1xi32, #tpu.memory_space<vmem>>, %arg2: memref<56x384xf32, #tpu.memory_space<vmem>>, %arg3: memref<128x384xbf16, #tpu.memory_space<vmem>>, %arg4: memref<1x384xf32, #tpu.memory_space<vmem>>, %arg5: memref<128x128xf32, #tpu.memory_space<vmem>>, %arg6: memref<1x128xf32, #tpu.memory_space<vmem>>, %arg7: memref<8x128xf32, #tpu.memory_space<vmem>>) attributes {dimension_semantics = [#tpu.dimension_semantics<arbitrary>], iteration_bounds = array<i64: 1>, scalar_prefetch = 0 : i64, scratch_operands = 0 : i64, tpu.core_type = #tpu.core_type<tc>, window_params = [{pipeline_mode = #tpu.pipeline_mode<synchronous>, transform_indices = @transform_0, window_bounds = array<i64: 64, 1>}, {pipeline_mode = #tpu.pipeline_mode<synchronous>, transform_indices = @transform_1, window_bounds = array<i64: 56, 384>}, {pipeline_mode = #tpu.pipeline_mode<synchronous>, transform_indices = @transform_2, window_bounds = array<i64: 128, 384>}, {pipeline_mode = #tpu.pipeline_mode<synchronous>, transform_indices = @transform_3, window_bounds = array<i64: 1, 384>}, {pipeline_mode = #tpu.pipeline_mode<synchronous>, transform_indices = @transform_4, window_bounds = array<i64: 128, 128>}, {pipeline_mode = #tpu.pipeline_mode<synchronous>, transform_indices = @transform_5, window_bounds = array<i64: 1, 128>}, {pipeline_mode = #tpu.pipeline_mode<synchronous>, transform_indices = @transform_6, window_bounds = array<i64: 8, 128>}]} {
    %c0 = arith.constant 0 : index
    %c0_0 = arith.constant 0 : index
    %0 = vector.load %arg1[%c0, %c0_0] : memref<64x1xi32, #tpu.memory_space<vmem>>, vector<64x1xi32>
    %1 = tpu.iota {dimensions = array<i32: 1>} : vector<64x56xi32>
    %2 = vector.broadcast %0 : vector<64x1xi32> to vector<64x56xi32>
    %3 = arith.cmpi eq, %2, %1 : vector<64x56xi32>
    %4 = arith.extui %3 : vector<64x56xi1> to vector<64x56xi32>
    %5 = arith.sitofp %4 : vector<64x56xi32> to vector<64x56xf32>
    %c0_1 = arith.constant 0 : index
    %c0_2 = arith.constant 0 : index
    %6 = vector.load %arg2[%c0_1, %c0_2] : memref<56x384xf32, #tpu.memory_space<vmem>>, vector<56x384xf32>
    %cst = arith.constant dense<0.000000e+00> : vector<64x384xf32>
    %7 = tpu.matmul %5, %6, %cst {dimension_numbers = #tpu.dot_dimension_numbers<[1], [0], [0], [1], [0, 0, 1, 1], [], []>} : vector<64x56xf32>, vector<56x384xf32>, vector<64x384xf32> -> vector<64x384xf32>
    %c0_3 = arith.constant 0 : index
    %c0_4 = arith.constant 0 : index
    %8 = vector.load %arg3[%c0_3, %c0_4] : memref<128x384xbf16, #tpu.memory_space<vmem>>, vector<128x384xbf16>
    %c0_5 = arith.constant 0 : index
    %c0_6 = arith.constant 0 : index
    %9 = vector.load %arg4[%c0_5, %c0_6] : memref<1x384xf32, #tpu.memory_space<vmem>>, vector<1x384xf32>
    %cst_7 = arith.constant 0.000000e+00 : f32
    %10 = vector.broadcast %cst_7 : f32 to vector<8x128xf32>
    %11 = vector.extract_strided_slice %7 {offsets = [0, 0], sizes = [8, 384], strides = [1, 1]} : vector<64x384xf32> to vector<8x384xf32>
    %12 = arith.truncf %10 : vector<8x128xf32> to vector<8x128xbf16>
    %cst_8 = arith.constant dense<0.000000e+00> : vector<8x384xf32>
    %13 = tpu.matmul %12, %8, %cst_8 {dimension_numbers = #tpu.dot_dimension_numbers<[1], [0], [0], [1], [0, 0, 1, 1], [], []>} : vector<8x128xbf16>, vector<128x384xbf16>, vector<8x384xf32> -> vector<8x384xf32>
    %14 = vector.broadcast %9 : vector<1x384xf32> to vector<8x384xf32>
    %15 = arith.addf %13, %14 : vector<8x384xf32>
    %16 = vector.extract_strided_slice %11 {offsets = [0, 0], sizes = [8, 128], strides = [1, 1]} : vector<8x384xf32> to vector<8x128xf32>
    %17 = vector.extract_strided_slice %11 {offsets = [0, 128], sizes = [8, 128], strides = [1, 1]} : vector<8x384xf32> to vector<8x128xf32>
    %18 = vector.extract_strided_slice %11 {offsets = [0, 256], sizes = [8, 128], strides = [1, 1]} : vector<8x384xf32> to vector<8x128xf32>
    %19 = vector.extract_strided_slice %15 {offsets = [0, 0], sizes = [8, 128], strides = [1, 1]} : vector<8x384xf32> to vector<8x128xf32>
    %20 = vector.extract_strided_slice %15 {offsets = [0, 128], sizes = [8, 128], strides = [1, 1]} : vector<8x384xf32> to vector<8x128xf32>
    %21 = vector.extract_strided_slice %15 {offsets = [0, 256], sizes = [8, 128], strides = [1, 1]} : vector<8x384xf32> to vector<8x128xf32>
    %22 = arith.addf %16, %19 : vector<8x128xf32>
    %23 = arith.negf %22 : vector<8x128xf32>
    %24 = math.exp %23 : vector<8x128xf32>
    %cst_9 = arith.constant 1.000000e+00 : f32
    %25 = vector.broadcast %cst_9 : f32 to vector<8x128xf32>
    %26 = arith.addf %25, %24 : vector<8x128xf32>
    %27 = arith.divf %25, %26 : vector<8x128xf32>
    %28 = arith.addf %17, %20 : vector<8x128xf32>
    %29 = arith.negf %28 : vector<8x128xf32>
    %30 = math.exp %29 : vector<8x128xf32>
    %cst_10 = arith.constant 1.000000e+00 : f32
    %31 = vector.broadcast %cst_10 : f32 to vector<8x128xf32>
    %32 = arith.addf %31, %30 : vector<8x128xf32>
    %33 = arith.divf %31, %32 : vector<8x128xf32>
    %34 = arith.mulf %27, %21 : vector<8x128xf32>
    %35 = arith.addf %18, %34 : vector<8x128xf32>
    %36 = math.tanh %35 : vector<8x128xf32>
    %37 = arith.subf %10, %36 : vector<8x128xf32>
    %38 = arith.mulf %33, %37 : vector<8x128xf32>
    %39 = arith.addf %36, %38 : vector<8x128xf32>
    %40 = vector.extract_strided_slice %7 {offsets = [8, 0], sizes = [8, 384], strides = [1, 1]} : vector<64x384xf32> to vector<8x384xf32>
    %41 = arith.truncf %39 : vector<8x128xf32> to vector<8x128xbf16>
    %cst_11 = arith.constant dense<0.000000e+00> : vector<8x384xf32>
    %42 = tpu.matmul %41, %8, %cst_11 {dimension_numbers = #tpu.dot_dimension_numbers<[1], [0], [0], [1], [0, 0, 1, 1], [], []>} : vector<8x128xbf16>, vector<128x384xbf16>, vector<8x384xf32> -> vector<8x384xf32>
    %43 = vector.broadcast %9 : vector<1x384xf32> to vector<8x384xf32>
    %44 = arith.addf %42, %43 : vector<8x384xf32>
    %45 = vector.extract_strided_slice %40 {offsets = [0, 0], sizes = [8, 128], strides = [1, 1]} : vector<8x384xf32> to vector<8x128xf32>
    %46 = vector.extract_strided_slice %40 {offsets = [0, 128], sizes = [8, 128], strides = [1, 1]} : vector<8x384xf32> to vector<8x128xf32>
    %47 = vector.extract_strided_slice %40 {offsets = [0, 256], sizes = [8, 128], strides = [1, 1]} : vector<8x384xf32> to vector<8x128xf32>
    %48 = vector.extract_strided_slice %44 {offsets = [0, 0], sizes = [8, 128], strides = [1, 1]} : vector<8x384xf32> to vector<8x128xf32>
    %49 = vector.extract_strided_slice %44 {offsets = [0, 128], sizes = [8, 128], strides = [1, 1]} : vector<8x384xf32> to vector<8x128xf32>
    %50 = vector.extract_strided_slice %44 {offsets = [0, 256], sizes = [8, 128], strides = [1, 1]} : vector<8x384xf32> to vector<8x128xf32>
    %51 = arith.addf %45, %48 : vector<8x128xf32>
    %52 = arith.negf %51 : vector<8x128xf32>
    %53 = math.exp %52 : vector<8x128xf32>
    %cst_12 = arith.constant 1.000000e+00 : f32
    %54 = vector.broadcast %cst_12 : f32 to vector<8x128xf32>
    %55 = arith.addf %54, %53 : vector<8x128xf32>
    %56 = arith.divf %54, %55 : vector<8x128xf32>
    %57 = arith.addf %46, %49 : vector<8x128xf32>
    %58 = arith.negf %57 : vector<8x128xf32>
    %59 = math.exp %58 : vector<8x128xf32>
    %cst_13 = arith.constant 1.000000e+00 : f32
    %60 = vector.broadcast %cst_13 : f32 to vector<8x128xf32>
    %61 = arith.addf %60, %59 : vector<8x128xf32>
    %62 = arith.divf %60, %61 : vector<8x128xf32>
    %63 = arith.mulf %56, %50 : vector<8x128xf32>
    %64 = arith.addf %47, %63 : vector<8x128xf32>
    %65 = math.tanh %64 : vector<8x128xf32>
    %66 = arith.subf %39, %65 : vector<8x128xf32>
    %67 = arith.mulf %62, %66 : vector<8x128xf32>
    %68 = arith.addf %65, %67 : vector<8x128xf32>
    %69 = vector.extract_strided_slice %7 {offsets = [16, 0], sizes = [8, 384], strides = [1, 1]} : vector<64x384xf32> to vector<8x384xf32>
    %70 = arith.truncf %68 : vector<8x128xf32> to vector<8x128xbf16>
    %cst_14 = arith.constant dense<0.000000e+00> : vector<8x384xf32>
    %71 = tpu.matmul %70, %8, %cst_14 {dimension_numbers = #tpu.dot_dimension_numbers<[1], [0], [0], [1], [0, 0, 1, 1], [], []>} : vector<8x128xbf16>, vector<128x384xbf16>, vector<8x384xf32> -> vector<8x384xf32>
    %72 = vector.broadcast %9 : vector<1x384xf32> to vector<8x384xf32>
    %73 = arith.addf %71, %72 : vector<8x384xf32>
    %74 = vector.extract_strided_slice %69 {offsets = [0, 0], sizes = [8, 128], strides = [1, 1]} : vector<8x384xf32> to vector<8x128xf32>
    %75 = vector.extract_strided_slice %69 {offsets = [0, 128], sizes = [8, 128], strides = [1, 1]} : vector<8x384xf32> to vector<8x128xf32>
    %76 = vector.extract_strided_slice %69 {offsets = [0, 256], sizes = [8, 128], strides = [1, 1]} : vector<8x384xf32> to vector<8x128xf32>
    %77 = vector.extract_strided_slice %73 {offsets = [0, 0], sizes = [8, 128], strides = [1, 1]} : vector<8x384xf32> to vector<8x128xf32>
    %78 = vector.extract_strided_slice %73 {offsets = [0, 128], sizes = [8, 128], strides = [1, 1]} : vector<8x384xf32> to vector<8x128xf32>
    %79 = vector.extract_strided_slice %73 {offsets = [0, 256], sizes = [8, 128], strides = [1, 1]} : vector<8x384xf32> to vector<8x128xf32>
    %80 = arith.addf %74, %77 : vector<8x128xf32>
    %81 = arith.negf %80 : vector<8x128xf32>
    %82 = math.exp %81 : vector<8x128xf32>
    %cst_15 = arith.constant 1.000000e+00 : f32
    %83 = vector.broadcast %cst_15 : f32 to vector<8x128xf32>
    %84 = arith.addf %83, %82 : vector<8x128xf32>
    %85 = arith.divf %83, %84 : vector<8x128xf32>
    %86 = arith.addf %75, %78 : vector<8x128xf32>
    %87 = arith.negf %86 : vector<8x128xf32>
    %88 = math.exp %87 : vector<8x128xf32>
    %cst_16 = arith.constant 1.000000e+00 : f32
    %89 = vector.broadcast %cst_16 : f32 to vector<8x128xf32>
    %90 = arith.addf %89, %88 : vector<8x128xf32>
    %91 = arith.divf %89, %90 : vector<8x128xf32>
    %92 = arith.mulf %85, %79 : vector<8x128xf32>
    %93 = arith.addf %76, %92 : vector<8x128xf32>
    %94 = math.tanh %93 : vector<8x128xf32>
    %95 = arith.subf %68, %94 : vector<8x128xf32>
    %96 = arith.mulf %91, %95 : vector<8x128xf32>
    %97 = arith.addf %94, %96 : vector<8x128xf32>
    %98 = vector.extract_strided_slice %7 {offsets = [24, 0], sizes = [8, 384], strides = [1, 1]} : vector<64x384xf32> to vector<8x384xf32>
    %99 = arith.truncf %97 : vector<8x128xf32> to vector<8x128xbf16>
    %cst_17 = arith.constant dense<0.000000e+00> : vector<8x384xf32>
    %100 = tpu.matmul %99, %8, %cst_17 {dimension_numbers = #tpu.dot_dimension_numbers<[1], [0], [0], [1], [0, 0, 1, 1], [], []>} : vector<8x128xbf16>, vector<128x384xbf16>, vector<8x384xf32> -> vector<8x384xf32>
    %101 = vector.broadcast %9 : vector<1x384xf32> to vector<8x384xf32>
    %102 = arith.addf %100, %101 : vector<8x384xf32>
    %103 = vector.extract_strided_slice %98 {offsets = [0, 0], sizes = [8, 128], strides = [1, 1]} : vector<8x384xf32> to vector<8x128xf32>
    %104 = vector.extract_strided_slice %98 {offsets = [0, 128], sizes = [8, 128], strides = [1, 1]} : vector<8x384xf32> to vector<8x128xf32>
    %105 = vector.extract_strided_slice %98 {offsets = [0, 256], sizes = [8, 128], strides = [1, 1]} : vector<8x384xf32> to vector<8x128xf32>
    %106 = vector.extract_strided_slice %102 {offsets = [0, 0], sizes = [8, 128], strides = [1, 1]} : vector<8x384xf32> to vector<8x128xf32>
    %107 = vector.extract_strided_slice %102 {offsets = [0, 128], sizes = [8, 128], strides = [1, 1]} : vector<8x384xf32> to vector<8x128xf32>
    %108 = vector.extract_strided_slice %102 {offsets = [0, 256], sizes = [8, 128], strides = [1, 1]} : vector<8x384xf32> to vector<8x128xf32>
    %109 = arith.addf %103, %106 : vector<8x128xf32>
    %110 = arith.negf %109 : vector<8x128xf32>
    %111 = math.exp %110 : vector<8x128xf32>
    %cst_18 = arith.constant 1.000000e+00 : f32
    %112 = vector.broadcast %cst_18 : f32 to vector<8x128xf32>
    %113 = arith.addf %112, %111 : vector<8x128xf32>
    %114 = arith.divf %112, %113 : vector<8x128xf32>
    %115 = arith.addf %104, %107 : vector<8x128xf32>
    %116 = arith.negf %115 : vector<8x128xf32>
    %117 = math.exp %116 : vector<8x128xf32>
    %cst_19 = arith.constant 1.000000e+00 : f32
    %118 = vector.broadcast %cst_19 : f32 to vector<8x128xf32>
    %119 = arith.addf %118, %117 : vector<8x128xf32>
    %120 = arith.divf %118, %119 : vector<8x128xf32>
    %121 = arith.mulf %114, %108 : vector<8x128xf32>
    %122 = arith.addf %105, %121 : vector<8x128xf32>
    %123 = math.tanh %122 : vector<8x128xf32>
    %124 = arith.subf %97, %123 : vector<8x128xf32>
    %125 = arith.mulf %120, %124 : vector<8x128xf32>
    %126 = arith.addf %123, %125 : vector<8x128xf32>
    %127 = vector.extract_strided_slice %7 {offsets = [32, 0], sizes = [8, 384], strides = [1, 1]} : vector<64x384xf32> to vector<8x384xf32>
    %128 = arith.truncf %126 : vector<8x128xf32> to vector<8x128xbf16>
    %cst_20 = arith.constant dense<0.000000e+00> : vector<8x384xf32>
    %129 = tpu.matmul %128, %8, %cst_20 {dimension_numbers = #tpu.dot_dimension_numbers<[1], [0], [0], [1], [0, 0, 1, 1], [], []>} : vector<8x128xbf16>, vector<128x384xbf16>, vector<8x384xf32> -> vector<8x384xf32>
    %130 = vector.broadcast %9 : vector<1x384xf32> to vector<8x384xf32>
    %131 = arith.addf %129, %130 : vector<8x384xf32>
    %132 = vector.extract_strided_slice %127 {offsets = [0, 0], sizes = [8, 128], strides = [1, 1]} : vector<8x384xf32> to vector<8x128xf32>
    %133 = vector.extract_strided_slice %127 {offsets = [0, 128], sizes = [8, 128], strides = [1, 1]} : vector<8x384xf32> to vector<8x128xf32>
    %134 = vector.extract_strided_slice %127 {offsets = [0, 256], sizes = [8, 128], strides = [1, 1]} : vector<8x384xf32> to vector<8x128xf32>
    %135 = vector.extract_strided_slice %131 {offsets = [0, 0], sizes = [8, 128], strides = [1, 1]} : vector<8x384xf32> to vector<8x128xf32>
    %136 = vector.extract_strided_slice %131 {offsets = [0, 128], sizes = [8, 128], strides = [1, 1]} : vector<8x384xf32> to vector<8x128xf32>
    %137 = vector.extract_strided_slice %131 {offsets = [0, 256], sizes = [8, 128], strides = [1, 1]} : vector<8x384xf32> to vector<8x128xf32>
    %138 = arith.addf %132, %135 : vector<8x128xf32>
    %139 = arith.negf %138 : vector<8x128xf32>
    %140 = math.exp %139 : vector<8x128xf32>
    %cst_21 = arith.constant 1.000000e+00 : f32
    %141 = vector.broadcast %cst_21 : f32 to vector<8x128xf32>
    %142 = arith.addf %141, %140 : vector<8x128xf32>
    %143 = arith.divf %141, %142 : vector<8x128xf32>
    %144 = arith.addf %133, %136 : vector<8x128xf32>
    %145 = arith.negf %144 : vector<8x128xf32>
    %146 = math.exp %145 : vector<8x128xf32>
    %cst_22 = arith.constant 1.000000e+00 : f32
    %147 = vector.broadcast %cst_22 : f32 to vector<8x128xf32>
    %148 = arith.addf %147, %146 : vector<8x128xf32>
    %149 = arith.divf %147, %148 : vector<8x128xf32>
    %150 = arith.mulf %143, %137 : vector<8x128xf32>
    %151 = arith.addf %134, %150 : vector<8x128xf32>
    %152 = math.tanh %151 : vector<8x128xf32>
    %153 = arith.subf %126, %152 : vector<8x128xf32>
    %154 = arith.mulf %149, %153 : vector<8x128xf32>
    %155 = arith.addf %152, %154 : vector<8x128xf32>
    %156 = vector.extract_strided_slice %7 {offsets = [40, 0], sizes = [8, 384], strides = [1, 1]} : vector<64x384xf32> to vector<8x384xf32>
    %157 = arith.truncf %155 : vector<8x128xf32> to vector<8x128xbf16>
    %cst_23 = arith.constant dense<0.000000e+00> : vector<8x384xf32>
    %158 = tpu.matmul %157, %8, %cst_23 {dimension_numbers = #tpu.dot_dimension_numbers<[1], [0], [0], [1], [0, 0, 1, 1], [], []>} : vector<8x128xbf16>, vector<128x384xbf16>, vector<8x384xf32> -> vector<8x384xf32>
    %159 = vector.broadcast %9 : vector<1x384xf32> to vector<8x384xf32>
    %160 = arith.addf %158, %159 : vector<8x384xf32>
    %161 = vector.extract_strided_slice %156 {offsets = [0, 0], sizes = [8, 128], strides = [1, 1]} : vector<8x384xf32> to vector<8x128xf32>
    %162 = vector.extract_strided_slice %156 {offsets = [0, 128], sizes = [8, 128], strides = [1, 1]} : vector<8x384xf32> to vector<8x128xf32>
    %163 = vector.extract_strided_slice %156 {offsets = [0, 256], sizes = [8, 128], strides = [1, 1]} : vector<8x384xf32> to vector<8x128xf32>
    %164 = vector.extract_strided_slice %160 {offsets = [0, 0], sizes = [8, 128], strides = [1, 1]} : vector<8x384xf32> to vector<8x128xf32>
    %165 = vector.extract_strided_slice %160 {offsets = [0, 128], sizes = [8, 128], strides = [1, 1]} : vector<8x384xf32> to vector<8x128xf32>
    %166 = vector.extract_strided_slice %160 {offsets = [0, 256], sizes = [8, 128], strides = [1, 1]} : vector<8x384xf32> to vector<8x128xf32>
    %167 = arith.addf %161, %164 : vector<8x128xf32>
    %168 = arith.negf %167 : vector<8x128xf32>
    %169 = math.exp %168 : vector<8x128xf32>
    %cst_24 = arith.constant 1.000000e+00 : f32
    %170 = vector.broadcast %cst_24 : f32 to vector<8x128xf32>
    %171 = arith.addf %170, %169 : vector<8x128xf32>
    %172 = arith.divf %170, %171 : vector<8x128xf32>
    %173 = arith.addf %162, %165 : vector<8x128xf32>
    %174 = arith.negf %173 : vector<8x128xf32>
    %175 = math.exp %174 : vector<8x128xf32>
    %cst_25 = arith.constant 1.000000e+00 : f32
    %176 = vector.broadcast %cst_25 : f32 to vector<8x128xf32>
    %177 = arith.addf %176, %175 : vector<8x128xf32>
    %178 = arith.divf %176, %177 : vector<8x128xf32>
    %179 = arith.mulf %172, %166 : vector<8x128xf32>
    %180 = arith.addf %163, %179 : vector<8x128xf32>
    %181 = math.tanh %180 : vector<8x128xf32>
    %182 = arith.subf %155, %181 : vector<8x128xf32>
    %183 = arith.mulf %178, %182 : vector<8x128xf32>
    %184 = arith.addf %181, %183 : vector<8x128xf32>
    %185 = vector.extract_strided_slice %7 {offsets = [48, 0], sizes = [8, 384], strides = [1, 1]} : vector<64x384xf32> to vector<8x384xf32>
    %186 = arith.truncf %184 : vector<8x128xf32> to vector<8x128xbf16>
    %cst_26 = arith.constant dense<0.000000e+00> : vector<8x384xf32>
    %187 = tpu.matmul %186, %8, %cst_26 {dimension_numbers = #tpu.dot_dimension_numbers<[1], [0], [0], [1], [0, 0, 1, 1], [], []>} : vector<8x128xbf16>, vector<128x384xbf16>, vector<8x384xf32> -> vector<8x384xf32>
    %188 = vector.broadcast %9 : vector<1x384xf32> to vector<8x384xf32>
    %189 = arith.addf %187, %188 : vector<8x384xf32>
    %190 = vector.extract_strided_slice %185 {offsets = [0, 0], sizes = [8, 128], strides = [1, 1]} : vector<8x384xf32> to vector<8x128xf32>
    %191 = vector.extract_strided_slice %185 {offsets = [0, 128], sizes = [8, 128], strides = [1, 1]} : vector<8x384xf32> to vector<8x128xf32>
    %192 = vector.extract_strided_slice %185 {offsets = [0, 256], sizes = [8, 128], strides = [1, 1]} : vector<8x384xf32> to vector<8x128xf32>
    %193 = vector.extract_strided_slice %189 {offsets = [0, 0], sizes = [8, 128], strides = [1, 1]} : vector<8x384xf32> to vector<8x128xf32>
    %194 = vector.extract_strided_slice %189 {offsets = [0, 128], sizes = [8, 128], strides = [1, 1]} : vector<8x384xf32> to vector<8x128xf32>
    %195 = vector.extract_strided_slice %189 {offsets = [0, 256], sizes = [8, 128], strides = [1, 1]} : vector<8x384xf32> to vector<8x128xf32>
    %196 = arith.addf %190, %193 : vector<8x128xf32>
    %197 = arith.negf %196 : vector<8x128xf32>
    %198 = math.exp %197 : vector<8x128xf32>
    %cst_27 = arith.constant 1.000000e+00 : f32
    %199 = vector.broadcast %cst_27 : f32 to vector<8x128xf32>
    %200 = arith.addf %199, %198 : vector<8x128xf32>
    %201 = arith.divf %199, %200 : vector<8x128xf32>
    %202 = arith.addf %191, %194 : vector<8x128xf32>
    %203 = arith.negf %202 : vector<8x128xf32>
    %204 = math.exp %203 : vector<8x128xf32>
    %cst_28 = arith.constant 1.000000e+00 : f32
    %205 = vector.broadcast %cst_28 : f32 to vector<8x128xf32>
    %206 = arith.addf %205, %204 : vector<8x128xf32>
    %207 = arith.divf %205, %206 : vector<8x128xf32>
    %208 = arith.mulf %201, %195 : vector<8x128xf32>
    %209 = arith.addf %192, %208 : vector<8x128xf32>
    %210 = math.tanh %209 : vector<8x128xf32>
    %211 = arith.subf %184, %210 : vector<8x128xf32>
    %212 = arith.mulf %207, %211 : vector<8x128xf32>
    %213 = arith.addf %210, %212 : vector<8x128xf32>
    %214 = vector.extract_strided_slice %7 {offsets = [56, 0], sizes = [8, 384], strides = [1, 1]} : vector<64x384xf32> to vector<8x384xf32>
    %215 = arith.truncf %213 : vector<8x128xf32> to vector<8x128xbf16>
    %cst_29 = arith.constant dense<0.000000e+00> : vector<8x384xf32>
    %216 = tpu.matmul %215, %8, %cst_29 {dimension_numbers = #tpu.dot_dimension_numbers<[1], [0], [0], [1], [0, 0, 1, 1], [], []>} : vector<8x128xbf16>, vector<128x384xbf16>, vector<8x384xf32> -> vector<8x384xf32>
    %217 = vector.broadcast %9 : vector<1x384xf32> to vector<8x384xf32>
    %218 = arith.addf %216, %217 : vector<8x384xf32>
    %219 = vector.extract_strided_slice %214 {offsets = [0, 0], sizes = [8, 128], strides = [1, 1]} : vector<8x384xf32> to vector<8x128xf32>
    %220 = vector.extract_strided_slice %214 {offsets = [0, 128], sizes = [8, 128], strides = [1, 1]} : vector<8x384xf32> to vector<8x128xf32>
    %221 = vector.extract_strided_slice %214 {offsets = [0, 256], sizes = [8, 128], strides = [1, 1]} : vector<8x384xf32> to vector<8x128xf32>
    %222 = vector.extract_strided_slice %218 {offsets = [0, 0], sizes = [8, 128], strides = [1, 1]} : vector<8x384xf32> to vector<8x128xf32>
    %223 = vector.extract_strided_slice %218 {offsets = [0, 128], sizes = [8, 128], strides = [1, 1]} : vector<8x384xf32> to vector<8x128xf32>
    %224 = vector.extract_strided_slice %218 {offsets = [0, 256], sizes = [8, 128], strides = [1, 1]} : vector<8x384xf32> to vector<8x128xf32>
    %225 = arith.addf %219, %222 : vector<8x128xf32>
    %226 = arith.negf %225 : vector<8x128xf32>
    %227 = math.exp %226 : vector<8x128xf32>
    %cst_30 = arith.constant 1.000000e+00 : f32
    %228 = vector.broadcast %cst_30 : f32 to vector<8x128xf32>
    %229 = arith.addf %228, %227 : vector<8x128xf32>
    %230 = arith.divf %228, %229 : vector<8x128xf32>
    %231 = arith.addf %220, %223 : vector<8x128xf32>
    %232 = arith.negf %231 : vector<8x128xf32>
    %233 = math.exp %232 : vector<8x128xf32>
    %cst_31 = arith.constant 1.000000e+00 : f32
    %234 = vector.broadcast %cst_31 : f32 to vector<8x128xf32>
    %235 = arith.addf %234, %233 : vector<8x128xf32>
    %236 = arith.divf %234, %235 : vector<8x128xf32>
    %237 = arith.mulf %230, %224 : vector<8x128xf32>
    %238 = arith.addf %221, %237 : vector<8x128xf32>
    %239 = math.tanh %238 : vector<8x128xf32>
    %240 = arith.subf %213, %239 : vector<8x128xf32>
    %241 = arith.mulf %236, %240 : vector<8x128xf32>
    %242 = arith.addf %239, %241 : vector<8x128xf32>
    %c0_32 = arith.constant 0 : index
    %c0_33 = arith.constant 0 : index
    %243 = vector.load %arg5[%c0_32, %c0_33] : memref<128x128xf32, #tpu.memory_space<vmem>>, vector<128x128xf32>
    %cst_34 = arith.constant dense<0.000000e+00> : vector<8x128xf32>
    %244 = tpu.matmul %242, %243, %cst_34 {dimension_numbers = #tpu.dot_dimension_numbers<[1], [0], [0], [1], [0, 0, 1, 1], [], []>} : vector<8x128xf32>, vector<128x128xf32>, vector<8x128xf32> -> vector<8x128xf32>
    %c0_35 = arith.constant 0 : index
    %c0_36 = arith.constant 0 : index
    %245 = vector.load %arg6[%c0_35, %c0_36] : memref<1x128xf32, #tpu.memory_space<vmem>>, vector<1x128xf32>
    %246 = vector.broadcast %245 : vector<1x128xf32> to vector<8x128xf32>
    %247 = arith.addf %244, %246 : vector<8x128xf32>
    %248 = arith.negf %247 : vector<8x128xf32>
    %249 = math.exp %248 : vector<8x128xf32>
    %cst_37 = arith.constant 1.000000e+00 : f32
    %250 = vector.broadcast %cst_37 : f32 to vector<8x128xf32>
    %251 = arith.addf %250, %249 : vector<8x128xf32>
    %252 = arith.divf %250, %251 : vector<8x128xf32>
    %c0_38 = arith.constant 0 : index
    %c0_39 = arith.constant 0 : index
    %253 = vector.load %arg7[%c0_38, %c0_39] : memref<8x128xf32, #tpu.memory_space<vmem>>, vector<8x128xf32>
    tpu.vector_store %arg7[%c0_38, %c0_39], %252 {strides = array<i32>} : memref<8x128xf32, #tpu.memory_space<vmem>>, vector<8x128xf32>,
    return
  }
  func.func @transform_0(%arg0: i32) -> (i32, i32) {
    %c0_i32 = arith.constant 0 : i32
    %c0_i32_0 = arith.constant 0 : i32
    %c0_i32_1 = arith.constant 0 : i32
    return %c0_i32, %c0_i32_0 : i32, i32
  }
  func.func @transform_1(%arg0: i32) -> (i32, i32) {
    %c0_i32 = arith.constant 0 : i32
    %c0_i32_0 = arith.constant 0 : i32
    %c0_i32_1 = arith.constant 0 : i32
    return %c0_i32, %c0_i32_0 : i32, i32
  }
  func.func @transform_2(%arg0: i32) -> (i32, i32) {
    %c0_i32 = arith.constant 0 : i32
    %c0_i32_0 = arith.constant 0 : i32
    %c0_i32_1 = arith.constant 0 : i32
    return %c0_i32, %c0_i32_0 : i32, i32
  }
  func.func @transform_3(%arg0: i32) -> (i32, i32) {
    %c0_i32 = arith.constant 0 : i32
    %c0_i32_0 = arith.constant 0 : i32
    %c0_i32_1 = arith.constant 0 : i32
    return %c0_i32, %c0_i32_0 : i32, i32
  }
  func.func @transform_4(%arg0: i32) -> (i32, i32) {
    %c0_i32 = arith.constant 0 : i32
    %c0_i32_0 = arith.constant 0 : i32
    %c0_i32_1 = arith.constant 0 : i32
    return %c0_i32, %c0_i32_0 : i32, i32
  }
  func.func @transform_5(%arg0: i32) -> (i32, i32) {
    %c0_i32 = arith.constant 0 : i32
    %c0_i32_0 = arith.constant 0 : i32
    %c0_i32_1 = arith.constant 0 : i32
    return %c0_i32, %c0_i32_0 : i32, i32
  }
  func.func @transform_6(%arg0: i32) -> (i32, i32) {
    %c0_i32 = arith.constant 0 : i32
    %c0_i32_0 = arith.constant 0 : i32
    %c0_i32_1 = arith.constant 0 : i32
    return %c0_i32, %c0_i32_0 : i32, i32
  }
}

</mosaic_0001>

<bundles_post_ra>
// kernel: rnn_forward.1
= control target key start
LH: loop header
LB: loop body
LE: loop exit
PB: predicated region body
PF: predicated region fallthrough
CT: control target
= control target key end

     0   :  { %11 = vsyncpa [#allocation3], 0  ;;  %s2681_s0 = inlined_call_operand.vmem [shape: s32[64,1], index: 0, kind: input, shape index: {}]   ;;  %s2682_s1 = inlined_call_operand.hbm [shape: f32[56,384], index: 1, kind: input, shape index: {}]   ;;  %s2683_s2 = inlined_call_operand.hbm [shape: bf16[128,384], index: 2, kind: input, shape index: {}]   ;;  %s2684_s3 = inlined_call_operand.vmem [shape: f32[1,384], index: 3, kind: input, shape index: {}]   ;;  %s2685_s4 = inlined_call_operand.hbm [shape: f32[128,128], index: 4, kind: input, shape index: {}]   ;;  %s2686_s5 = inlined_call_operand.vmem [shape: f32[1,128], index: 5, kind: input, shape index: {}]   ;;  %s2687_s6 = inlined_call_operand.vmem [shape: f32[8,128], index: 6, kind: output, shape index: {}]  }
   0x1   :  { %12 = vsyncpa [#allocation5], 0  ;;  %s2082_s21 = smov [#allocation4]  }
   0x2   :  { %s32_s22 = sshll.u32 %s2082_s21, 4  ;;  %s33_s22 = int_to_ptr.vmem [resolvable:$true] %s32_s22 }
   0x3   :  { %s2026_s23 = scalar_lea.vmem %s33_s22, 3072  ;;  %p2031_p1 = scmp.lt.s32.totalorder %s33_s22, %s33_s22 }
   0x4   :  { %p2027_p0 = scmp.ne.s32.totalorder %s33_s22, %s2026_s23  ;;  %p2032_p2 = scmp.lt.s32.totalorder %s2026_s23, %s2026_s23 }
   0x6   :  { %p2033_p3 = por %p2032_p2, %p2031_p1 }
   0x8   :  { %p2034_p4 = pnand %p2033_p3, %p2027_p0 }
   0xa   :  { %2037 = shalt.err (!%p2034_p4)
}
   0xb   :  { %s2083_s24 = smov 192   ;;  %s2084_s25 = smov 12  }
   0xc   :  { %38 = dma.hbm_to_vmem [thread:$0]  %s2683_s2, 3072, %s33_s22, [#allocation5], %s2083_s24, %s2083_s24, %s2084_s25  }
   0xd   :  { %s2085_s28 = smov [#allocation2]  }
   0xe   :  { %s20_s29 = sshll.u32 %s2085_s28, 4  ;;  %s21_s29 = int_to_ptr.vmem [resolvable:$true] %s20_s29 }
   0xf   :  { %s2046_s30 = scalar_lea.vmem %s21_s29, 2688  ;;  %p2051_p6 = scmp.lt.s32.totalorder %s21_s29, %s21_s29 }
  0x10   :  { %p2047_p5 = scmp.ne.s32.totalorder %s21_s29, %s2046_s30  ;;  %p2052_p7 = scmp.lt.s32.totalorder %s2046_s30, %s2046_s30 }
  0x12   :  { %p2053_p8 = por %p2052_p7, %p2051_p6 }
  0x14   :  { %p2054_p9 = pnand %p2053_p8, %p2047_p5 }
  0x16   :  { %2057 = shalt.err (!%p2054_p9)
}
  0x17   :  { %s2086_s7 = smov 384   ;;  %s2087_s8 = smov 24  }
  0x18   :  { %26 = dma.hbm_to_vmem [thread:$0]  %s2682_s1, 2688, %s21_s29, [#allocation3], %s2086_s7, %s2086_s7, %s2087_s8  }
  0x19   :  { %s2088_s11 = smov [#allocation6]  }
  0x1a   :  { %s46_s12 = sshll.u32 %s2088_s11, 4  ;;  %s47_s12 = int_to_ptr.vmem [resolvable:$true] %s46_s12 }
  0x1b   :  { %s2066_s2 = scalar_lea.vmem %s47_s12, 2048  ;;  %p2071_p11 = scmp.lt.s32.totalorder %s47_s12, %s47_s12 }
  0x1c   :  { %p2067_p10 = scmp.ne.s32.totalorder %s47_s12, %s2066_s2  ;;  %p2072_p12 = scmp.lt.s32.totalorder %s2066_s2, %s2066_s2 }
  0x1e   :  { %p2073_p13 = por %p2072_p12, %p2071_p11 }
  0x20   :  { %p2074_p0 = pnand %p2073_p13, %p2067_p10 }
  0x22   :  { %2077 = shalt.err (!%p2074_p0)
}
  0x23   :  { %s2089_s13 = smov 128   ;;  %s2090_s14 = smov 8  }
  0x24   :  { %52 = dma.hbm_to_vmem [thread:$0]  %s2685_s4, 2048, %s47_s12, [#allocation5], %s2089_s13, %s2089_s13, %s2090_s14  }
  0x25   :  { %2078 = dma.done.wait [#allocation3], 2688  }
  0x26   :  { %2079 = vsyncadd [#allocation3], 4294964608 }
  0x27   :  { %2080 = dma.done.wait [#allocation5], 5120  }
  0x28   :  { %2081 = vsyncadd [#allocation5], 4294962176  ;;  %v2688_v0 = vmov 0   ;;  %v2690_v1 = vmov 0.0   ;;  %v67_v2 = vld [vmem:[%s2681_s0 + $0x10] sm:$0xff]  ;;  %v65_v3 = vld [vmem:[%s2681_s0] sm:$0xff]  ;;  %v73_v32 = vlaneseq }
  0x29   :  { %1889 = vset.pattern.permute.xlu1 %v2688_v0  ;;  %1888 = vset.pattern.permute.xlu0 %v2688_v0  ;;  %v68_v4 = vld [vmem:[%s2681_s0 + $0x18] sm:$0xff]  ;;  %v66_v5 = vld [vmem:[%s2681_s0 + $0x8] sm:$0xff]  ;;  %v141_v7 = vld [vmem:[#allocation2 + $0x90] sm:$0xff]  ;;  %vm144_vm0 = vcmask 457728   ;;  %vm2093_vm9 = vmmov 0  }
  0x2a   :  { %233 = vmatprep.mubr.f32.mxu0 %v2690_v1  ;;  %82 = vperm.xlu1 %1889, %v67_v2   ;;  %v142_v6 = vld [vmem:[#allocation2 + $0x98] sm:$0xff]  ;;  %v139_v8 = vld [vmem:[#allocation2 + $0x80] sm:$0xff]  ;;  %v136_v11 = vld [vmem:[#allocation2 + $0x68] sm:$0xff]  ;;  %v2170_v33 = vand.u32 127, %v73_v32 }
  0x2b   :  { %76 = vperm.xlu0 %1888, %v65_v3   ;;  %187 = vmatprep.subr.mxu0 %v142_v6  ;;  %v138_v9 = vld [vmem:[#allocation2 + $0x78] sm:$0xff]  ;;  %v143_v10 = vld [vmem:[#allocation2 + $0xa0] sm:$0xff]  ;;  %v140_v12 = vld [vmem:[#allocation2 + $0x88] sm:$0xff] }
  0x2c   :  { %188 = vmatpush1.msra.mxu0 %v141_v7  ;;  %v70_v13 = vld [vmem:[%s2681_s0 + $0x28] sm:$0xff]  ;;  %v69_v14 = vld [vmem:[%s2681_s0 + $0x20] sm:$0xff]  ;;  %1655 = vmatprep.subr.mxu1 %v143_v10  ;;  %v72_v16 = vld [vmem:[%s2681_s0 + $0x38] sm:$0xff] }
  0x2d   :  { %189 = vmatprep.subr.mxu0 %v139_v8  ;;  %v135_v15 = vld [vmem:[#allocation2 + $0x60] sm:$0xff]  ;;  %1656 = vmatpush3.msra.mxu1 %v143_v10  ;;  %v133_v17 = vld [vmem:[#allocation2 + $0x50] sm:$0xff]  ;;  %v132_v19 = vld [vmem:[#allocation2 + $0x48] sm:$0xff] }
  0x2e   :  { %85 = vperm.xlu1 %1889, %v68_v4   ;;  %190 = vmatpush1.msra.mxu0 %v138_v9  ;;  %v137_v18 = vld [vmem:[#allocation2 + $0x70] sm:$0xff]  ;;  %v130_v21 = vld [vmem:[#allocation2 + $0x38] sm:$0xff]  ;;  %v127_v24 = vld [vmem:[#allocation2 + $0x20] sm:$0xff] }
  0x2f   :  { %79 = vperm.xlu0 %1888, %v66_v5   ;;  %191 = vmatprep.subr.mxu0 %v136_v11  ;;  %v71_v20 = vld [vmem:[%s2681_s0 + $0x30] sm:$0xff]  ;;  %v134_v23 = vld [vmem:[#allocation2 + $0x58] sm:$0xff]  ;;  %v131_v26 = vld [vmem:[#allocation2 + $0x40] sm:$0xff] }
  0x30   :  { %1657 = vmatprep.subr.mxu1 %v140_v12  ;;  %192 = vmatpush1.msra.mxu0 %v135_v15  ;;  %v129_v22 = vld [vmem:[#allocation2 + $0x30] sm:$0xff]  ;;  %v126_v25 = vld [vmem:[#allocation2 + $0x18] sm:$0xff]  ;;  %v124_v27 = vld [vmem:[#allocation2 + $0x8] sm:$0xff] }
  0x31   :  { %1658 = vmatpush3.msra.mxu1 %v140_v12  ;;  %193 = vmatprep.subr.mxu0 %v133_v17  ;;  %v123_v28 = vld [vmem:[#allocation2] sm:$0xff]  ;;  %v128_v29 = vld [vmem:[#allocation2 + $0x28] sm:$0xff]  ;;  %v125_v31 = vld [vmem:[#allocation2 + $0x10] sm:$0xff] }
  0x32   :  { %91 = vperm.xlu1 %1889, %v70_v13   ;;  %1659 = vmatprep.subr.mxu1 %v137_v18  ;;  %v2165_v30 = vld [vmem:[#allocation4 + $0xac] ss:$12 sps:$4 sm:$0xff]   ;;  %v2172_v36 = vld [vmem:[#allocation4 + $0xa8] ss:$12 sps:$4 sm:$0xff]   ;;  %v2183_v41 = vld [vmem:[#allocation4 + $0x90] ss:$12 sps:$4 sm:$0xff]  }
  0x33   :  { %88 = vperm.xlu0 %1888, %v69_v14   ;;  %194 = vmatpush1.msra.mxu0 %v132_v19  ;;  %v2175_v37 = vld [vmem:[#allocation4 + $0x94] ss:$12 sps:$4 sm:$0xff]   ;;  %v2188_v42 = vld [vmem:[#allocation4 + $0x7c] ss:$12 sps:$4 sm:$0xff]   ;;  %v2199_v49 = vld [vmem:[#allocation4 + $0x78] ss:$12 sps:$4 sm:$0xff]  }
  0x34   :  { %1660 = vmatpush3.msra.mxu1 %v137_v18  ;;  %195 = vmatprep.subr.mxu0 %v130_v21  ;;  %v2192_v45 = vld [vmem:[#allocation4 + $0xb0] ss:$12 sps:$4 sm:$0xff]   ;;  %v2213_v54 = vld [vmem:[#allocation4 + $0x60] ss:$12 sps:$4 sm:$0xff]   ;;  %v2223_v58 = vld [vmem:[#allocation4 + $0x98] ss:$12 sps:$4 sm:$0xff]  }
  0x35   :  { %1661 = vmatprep.subr.mxu1 %v134_v23  ;;  %196 = vmatpush1.msra.mxu0 %v129_v22  ;;  %v2204_v50 = vld [vmem:[#allocation4 + $0x64] ss:$12 sps:$4 sm:$0xff]   ;;  %v2218_v55 = vld [vmem:[#allocation4 + $0x4c] ss:$12 sps:$4 sm:$0xff]   ;;  %v2230_v59 = vld [vmem:[#allocation4 + $0x48] ss:$12 sps:$4 sm:$0xff]  }
  0x36   :  { %97 = vperm.xlu1 %1889, %v72_v16   ;;  %1662 = vmatpush3.msra.mxu1 %v134_v23  ;;  %v2234_v60 = vld [vmem:[#allocation4 + $0x34] ss:$12 sps:$4 sm:$0xff]   ;;  %v2244_v63 = vld [vmem:[#allocation4 + $0x30] ss:$12 sps:$4 sm:$0xff]   ;;  %v2259_v4 = vld [vmem:[#allocation4 + $0x18] ss:$12 sps:$4 sm:$0xff]  }
  0x37   :  { %94 = vperm.xlu0 %1888, %v71_v20   ;;  %197 = vmatprep.subr.mxu0 %v127_v24  ;;  %v2238_v62 = vld [vmem:[#allocation4 + $0x80] ss:$12 sps:$4 sm:$0xff]   ;;  %v2247_v2 = vld [vmem:[#allocation4 + $0x1c] ss:$12 sps:$4 sm:$0xff]   ;;  %v2262_v5 = vld [vmem:[#allocation4 + $0x4] ss:$12 sps:$4 sm:$0xff]  }
  0x38   :  { %1663 = vmatprep.subr.mxu1 %v131_v26  ;;  %198 = vmatpush1.msra.mxu0 %v126_v25  ;;  %v2251_v3 = vld [vmem:[#allocation4 + $0x68] ss:$12 sps:$4 sm:$0xff]   ;;  %v2265_v6 = vld [vmem:[#allocation4 + $0x50] ss:$12 sps:$4 sm:$0xff]   ;;  %v2271_v7 = vld [vmem:[#allocation4] ss:$12 sps:$4 sm:$0xff]  }
  0x39   :  { %1664 = vmatpush3.msra.mxu1 %v131_v26  ;;  %199 = vmatprep.subr.mxu0 %v124_v27  ;;  %v2275_v8 = vld [vmem:[#allocation4 + $0x38] ss:$12 sps:$4 sm:$0xff]   ;;  %v2283_v9 = vld [vmem:[#allocation4 + $0x20] ss:$12 sps:$4 sm:$0xff]   ;;  %v2291_v10 = vld [vmem:[#allocation4 + $0x8] ss:$12 sps:$4 sm:$0xff]  }
  0x3a   :  { %1665 = vmatprep.subr.mxu1 %v128_v29  ;;  %200 = vmatpush1.msra.mxu0 %v123_v28  ;;  %v422_v25 = vshrl.u32 %v73_v32, 7 }
  0x3b   :  { %1666 = vmatpush3.msra.mxu1 %v128_v29  ;;  %564 = vmatprep.subr.bf16.mxu0 %v2165_v30 }
  0x3c   :  { %1667 = vmatprep.subr.mxu1 %v125_v31  ;;  %v423_v29 = vsub.s32 0, %v422_v25 }
  0x3d   :  { %1668 = vmatpush3.msra.mxu1 %v125_v31 }
  0x3e   :  { %1681 = vmatprep.subr.bf16.mxu1 %v2690_v1 }
  0xa5   :  { %v83_v34 = vpop.permute.xlu1 %82 }
  0xa6   :  { %v77_v35 = vpop.permute.xlu0 %76  ;;  %vm101_vm2 = vcmp.eq.s32.totalorder %v83_v34, %v2170_v33 }
  0xa7   :  { %vm99_vm1 = vcmp.eq.s32.totalorder %v77_v35, %v2170_v33  ;;  %v1487_v43 = vsel %vm101_vm2, 1.0, %v2690_v1 }
  0xa8   :  { %v1485_v38 = vsel %vm99_vm1, 1.0, %v2690_v1 }
  0xa9   :  { %1493 = vmatmul.mubr.msk.f32.vlgmr.msra.gmra.mxu0 %vm144_vm0, %v1485_v38  ;;  %1669 = vmatprep.mubr.msk.f32.mxu1 %vm144_vm0, %v1485_v38  ;;  %v86_v39 = vpop.permute.xlu1 %85 }
  0xaa   :  { %565 = vmatpush1.bf16.msra.mxu0 %v2172_v36  ;;  %v80_v40 = vpop.permute.xlu0 %79  ;;  %239 = vmatprep.mubr.f32.mxu0 %v2690_v1  ;;  %vm102_vm3 = vcmp.eq.s32.totalorder %v86_v39, %v2170_v33 }
  0xab   :  { %vm100_vm4 = vcmp.eq.s32.totalorder %v80_v40, %v2170_v33  ;;  %566 = vmatprep.subr.bf16.mxu0 %v2175_v37  ;;  %v1488_v46 = vsel %vm102_vm3, 1.0, %v2690_v1 }
  0xac   :  { %v1486_v44 = vsel %vm100_vm4, 1.0, %v2690_v1 }
  0xad   :  { %1494 = vmatmul.mubr.msk.f32.gmra.mxu0 %vm144_vm0, %v1486_v44  ;;  %1670 = vmatmul.mubr.msk.f32.vlgmr.msra.gmra.mxu1 %vm144_vm0, %v1486_v44  ;;  %v92_v47 = vpop.permute.xlu1 %91  ;;  %v427_v44 = vsub.s32 1, %v422_v25 }
  0xae   :  { %567 = vmatpush1.bf16.msra.mxu0 %v2183_v41  ;;  %v89_v48 = vpop.permute.xlu0 %88  ;;  %245 = vmatprep.mubr.f32.mxu0 %v2690_v1  ;;  %vm104_vm6 = vcmp.eq.s32.totalorder %v92_v47, %v2170_v33 }
  0xaf   :  { %vm103_vm5 = vcmp.eq.s32.totalorder %v89_v48, %v2170_v33  ;;  %1672 = vmatprep.mubr.msk.f32.mxu1 %vm144_vm0, %v1487_v43  ;;  %568 = vmatprep.subr.bf16.mxu0 %v2188_v42  ;;  %v1490_v56 = vsel %vm104_vm6, 1.0, %v2690_v1 }
  0xb0   :  { %v1489_v51 = vsel %vm103_vm5, 1.0, %v2690_v1  ;;  %1682 = vmatpush3.bf16.msra.mxu1 %v2192_v45 }
  0xb1   :  { %1495 = vmatmul.mubr.msk.f32.gmra.mxu0 %vm144_vm0, %v1487_v43  ;;  %1673 = vmatmul.mubr.msk.f32.gmra.mxu1 %vm144_vm0, %v1488_v46  ;;  %v98_v52 = vpop.permute.xlu1 %97 }
  0xb2   :  { %569 = vmatpush1.bf16.msra.mxu0 %v2199_v49  ;;  %1675 = vmatprep.mubr.msk.f32.mxu1 %vm144_vm0, %v1489_v51  ;;  %v95_v53 = vpop.permute.xlu0 %94  ;;  %vm106_vm8 = vcmp.eq.s32.totalorder %v98_v52, %v2170_v33 }
  0xb3   :  { %vm105_vm7 = vcmp.eq.s32.totalorder %v95_v53, %v2170_v33  ;;  %251 = vmatprep.mubr.f32.mxu0 %v2690_v1  ;;  %570 = vmatprep.subr.bf16.mxu0 %v2204_v50  ;;  %v1492_v61 = vsel %vm106_vm8, 1.0, %v2690_v1  ;;  %v419_v33 = vld [vmem:[%s2684_s3] sm:$0x7] }
  0xb4   :  { %v1491_v57 = vsel %vm105_vm7, 1.0, %v2690_v1  ;;  %1683 = vmatprep.subr.bf16.mxu1 %v2690_v1  ;;  %v2367_v38 = vrot.slane %v419_v33, %v423_v29  ;;  %v2376_v53 = vrot.slane %v419_v33, %v427_v44 }
  0xb5   :  { %1496 = vmatmul.mubr.msk.f32.gmra.mxu0 %vm144_vm0, %v1488_v46  ;;  %1676 = vmatmul.mubr.msk.f32.gmra.mxu1 %vm144_vm0, %v1490_v56 }
  0xb6   :  { %571 = vmatpush1.bf16.msra.mxu0 %v2213_v54  ;;  %1678 = vmatprep.mubr.msk.f32.mxu1 %vm144_vm0, %v1491_v57 }
  0xb7   :  { %257 = vmatprep.mubr.f32.mxu0 %v2690_v1  ;;  %572 = vmatprep.subr.bf16.mxu0 %v2218_v55 }
  0xb8   :  { %1684 = vmatpush3.bf16.msra.mxu1 %v2223_v58 }
  0xb9   :  { %1497 = vmatmul.mubr.msk.f32.gmra.mxu0 %vm144_vm0, %v1489_v51  ;;  %1679 = vmatmul.mubr.msk.f32.gmra.mxu1 %vm144_vm0, %v1492_v61 }
  0xba   :  { %573 = vmatpush1.bf16.msra.mxu0 %v2230_v59  ;;  %263 = vmatprep.mubr.f32.mxu0 %v2690_v1 }
  0xbb   :  { %574 = vmatprep.subr.bf16.mxu0 %v2234_v60  ;;  %1685 = vmatprep.subr.bf16.mxu1 %v2690_v1 }
  0xbc   :  { %1686 = vmatpush3.bf16.msra.mxu1 %v2238_v62  ;;  %1697 = vmatprep.mubr.msk.bf16.mxu1 %vm2093_vm9, %v2690_v1 }
  0xbd   :  { %1498 = vmatmul.mubr.msk.f32.gmra.mxu0 %vm144_vm0, %v1490_v56  ;;  %1687 = vmatprep.subr.bf16.mxu1 %v2690_v1 }
  0xbe   :  { %575 = vmatpush1.bf16.msra.mxu0 %v2244_v63  ;;  %269 = vmatprep.mubr.f32.mxu0 %v2690_v1 }
  0xbf   :  { %576 = vmatprep.subr.bf16.mxu0 %v2247_v2 }
  0xc0   :  { %1688 = vmatpush3.bf16.msra.mxu1 %v2251_v3 }
  0xc1   :  { %1499 = vmatmul.mubr.msk.f32.gmra.mxu0 %vm144_vm0, %v1491_v57  ;;  %1689 = vmatprep.subr.bf16.mxu1 %v2690_v1 }
  0xc2   :  { %577 = vmatpush1.bf16.msra.mxu0 %v2259_v4  ;;  %275 = vmatprep.mubr.f32.mxu0 %v2690_v1 }
  0xc3   :  { %578 = vmatprep.subr.bf16.mxu0 %v2262_v5 }
  0xc4   :  { %1690 = vmatpush3.bf16.msra.mxu1 %v2265_v6 }
  0xc5   :  { %1500 = vmatmul.mubr.msk.f32.gmra.mxu0 %vm144_vm0, %v1492_v61  ;;  %1691 = vmatprep.subr.bf16.mxu1 %v2690_v1 }
  0xc6   :  { %579 = vmatpush1.bf16.msra.mxu0 %v2271_v7  ;;  %596 = vmatprep.mubr.bf16.mxu0 %v2688_v0 }
  0xc7   :  { %666 = vmatprep.subr.bf16.mxu0 %v2165_v30 }
  0xc8   :  { %1692 = vmatpush3.bf16.msra.mxu1 %v2275_v8 }
  0xc9   :  { %597 = vmatmul.mubr.bf16.vlgmr.msra.gmra.mxu0 %v2688_v0  ;;  %1693 = vmatprep.subr.bf16.mxu1 %v2690_v1 }
  0xca   :  { %667 = vmatpush1.bf16.msra.mxu0 %v2172_v36  ;;  %698 = vmatprep.mubr.bf16.mxu0 %v2688_v0 }
  0xcb   :  { %668 = vmatprep.subr.bf16.mxu0 %v2175_v37 }
  0xcc   :  { %1694 = vmatpush3.bf16.msra.mxu1 %v2283_v9 }
  0xcd   :  { %1695 = vmatprep.subr.bf16.mxu1 %v2690_v1 }
  0xce   :  { %669 = vmatpush1.bf16.msra.mxu0 %v2183_v41 }
  0xcf   :  { %670 = vmatprep.subr.bf16.mxu0 %v2188_v42 }
  0xd0   :  { %1696 = vmatpush3.bf16.msra.mxu1 %v2291_v10 }
  0xd1   :  { %1701 = vmatprep.subr.bf16.mxu1 %v2690_v1 }
  0xd2   :  { %671 = vmatpush1.bf16.msra.mxu0 %v2199_v49 }
  0xd3   :  { %1698 = vmatmul.mubr.bf16.vlgmr.msra.gmra.mxu1 %v2688_v0  ;;  %672 = vmatprep.subr.bf16.mxu0 %v2204_v50 }
  0xd4   :  { %1702 = vmatpush3.bf16.msra.mxu1 %v2192_v45  ;;  %1717 = vmatprep.mubr.msk.bf16.mxu1 %vm2093_vm9, %v2690_v1 }
  0xd5   :  { %1703 = vmatprep.subr.bf16.mxu1 %v2690_v1 }
  0xd6   :  { %673 = vmatpush1.bf16.msra.mxu0 %v2213_v54 }
  0xd7   :  { %674 = vmatprep.subr.bf16.mxu0 %v2218_v55 }
  0xd8   :  { %1704 = vmatpush3.bf16.msra.mxu1 %v2223_v58 }
  0xd9   :  { %1705 = vmatprep.subr.bf16.mxu1 %v2690_v1 }
  0xda   :  { %675 = vmatpush1.bf16.msra.mxu0 %v2230_v59 }
  0xdb   :  { %676 = vmatprep.subr.bf16.mxu0 %v2234_v60 }
  0xdc   :  { %1706 = vmatpush3.bf16.msra.mxu1 %v2238_v62 }
  0xdd   :  { %1707 = vmatprep.subr.bf16.mxu1 %v2690_v1 }
  0xde   :  { %677 = vmatpush1.bf16.msra.mxu0 %v2244_v63 }
  0xdf   :  { %678 = vmatprep.subr.bf16.mxu0 %v2247_v2 }
  0xe0   :  { %1708 = vmatpush3.bf16.msra.mxu1 %v2251_v3 }
  0xe1   :  { %1709 = vmatprep.subr.bf16.mxu1 %v2690_v1 }
  0xe2   :  { %679 = vmatpush1.bf16.msra.mxu0 %v2259_v4 }
  0xe3   :  { %680 = vmatprep.subr.bf16.mxu0 %v2262_v5 }
  0xe4   :  { %1710 = vmatpush3.bf16.msra.mxu1 %v2265_v6 }
  0xe5   :  { %1711 = vmatprep.subr.bf16.mxu1 %v2690_v1 }
  0xe6   :  { %681 = vmatpush1.bf16.msra.mxu0 %v2271_v7 }
  0xe7   :  { %768 = vmatprep.subr.bf16.mxu0 %v2165_v30 }
  0xe8   :  { %1712 = vmatpush3.bf16.msra.mxu1 %v2275_v8 }
  0xe9   :  { %1713 = vmatprep.subr.bf16.mxu1 %v2690_v1 }
  0xec   :  { %1714 = vmatpush3.bf16.msra.mxu1 %v2283_v9 }
  0xed   :  { %1715 = vmatprep.subr.bf16.mxu1 %v2690_v1 }
  0xf0   :  { %1716 = vmatpush3.bf16.msra.mxu1 %v2291_v10 }
  0xf1   :  { %1721 = vmatprep.subr.bf16.mxu1 %v2690_v1 }
 0x169   :  { %v235_v11 = vpop.f32.mrf.mxu0 }
 0x16b   :  { %v237_v12 = vpop.f32.mrf.mxu0 }
 0x16d   :  { %v2329_v13 = vpop.f32.mrf.mxu0  ;;  %v2337_v17 = vpop.f32.mrf.mxu1 }
 0x16f   :  { %v2331_v14 = vpop.f32.mrf.mxu0  ;;  %v348_v20 = vpop.f32.mrf.mxu1 }
 0x171   :  { %v2333_v15 = vpop.f32.mrf.mxu0  ;;  %v2347_v23 = vpop.f32.mrf.mxu1 }
 0x173   :  { %v2335_v16 = vpop.f32.mrf.mxu0  ;;  %v2354_v27 = vpop.f32.mrf.mxu1 }
 0x175   :  { %v2339_v18 = vpop.f32.mrf.mxu0  ;;  %v2363_v34 = vpop.f32.mrf.mxu1 }
 0x177   :  { %v2341_v19 = vpop.f32.mrf.mxu0  ;;  %v2371_v39 = vpop.f32.mrf.mxu1 }
 0x179   :  { %v2343_v21 = vpop.f32.mrf.mxu0  ;;  %v2374_v48 = vpop.f32.mrf.mxu1 }
 0x17a   :  { %2695 = vst [vmem:[#allocation12_spill] sm:$0xff] %v2374_v48 }
 0x17b   :  { %v2345_v22 = vpop.f32.mrf.mxu0  ;;  %v2378_v57 = vpop.f32.mrf.mxu1 }
 0x17d   :  { %v2349_v24 = vpop.f32.mrf.mxu0 }
 0x17f   :  { %v2352_v26 = vpop.f32.mrf.mxu0 }
 0x181   :  { %v2356_v28 = vpop.f32.mrf.mxu0 }
 0x183   :  { %v2358_v31 = vpop.f32.mrf.mxu0 }
 0x184   :  { %2692 = vst [vmem:[#allocation9_spill] sm:$0xff] %v2358_v31 }
 0x185   :  { %v2365_v35 = vpop.f32.mrf.mxu0 }
 0x186   :  { %2693 = vst [vmem:[#allocation10_spill] sm:$0xff] %v2365_v35 }
 0x187   :  { %v2369_v32 = vpop.f32.mrf.mxu0 }
 0x188   :  { %2694 = vst [vmem:[#allocation11_spill] sm:$0xff] %v2369_v32 }
 0x189   :  { %v598_v40 = vpop.f32.mrf.mxu0 }
 0x18a   :  { %v599_v43 = vadd.f32 %v598_v40, %v2367_v38 }
 0x18b   :  { %v600_v46 = vpop.f32.mrf.mxu0 }
 0x18c   :  { %v645_v47 = vadd.f32 %v599_v43, %v235_v11  ;;  %v601_v61 = vadd.f32 %v600_v46, %v2376_v53  ;;  %v431_v43 = vsub.s32 2, %v422_v25 }
 0x18d   :  { %v602_v51 = vpop.f32.mrf.mxu0 }
 0x18e   :  { %v1533_v52 = vmul.f32 -1.442695, %v645_v47  ;;  %v652_v1 = vadd.f32 %v601_v61, %v237_v12  ;;  %v2381_v47 = vrot.slane %v419_v33, %v431_v43 }
 0x18f   :  { %v603_v56 = vpop.f32.mrf.mxu0 }
 0x190   :  { %1922 = vpow2.f32 %v1533_v52  ;;  %v1534_v35 = vmul.f32 -1.442695, %v652_v1 }
 0x192   :  { %1924 = vpow2.f32 %v1534_v35 }
 0x193   :  { %v639_v29 = vpop.f32.mrf.mxu1 }
 0x194   :  { %v640_v44 = vadd.f32 %v639_v29, %v2381_v47 }
 0x195   :  { %v1699_v0 = vpop.f32.mrf.mxu1 }
 0x197   :  { %v642_v32 = vpop.f32.mrf.mxu1 }
 0x199   :  { %v1700_v40 = vpop.f32.mrf.mxu1 }
 0x19d   :  { %v1923_v31 = vpop.eup %1922 }
 0x19e   :  { %v649_v11 = vadd.f32 1.0, %v1923_v31  ;;  %v2697_v31 = vmov 0  }
 0x19f   :  { %v1925_v51 = vpop.eup %1924 }
 0x1a0   :  { %1926 = vrcp.f32 %v649_v11  ;;  %v656_v48 = vadd.f32 1.0, %v1925_v51 }
 0x1ad   :  { %v1927_v52 = vpop.eup %1926 }
 0x1ae   :  { %v659_v56 = vmul.f32 %v1927_v52, %v640_v44 }
 0x1b0   :  { %v660_v46 = vadd.f32 %v659_v56, %v348_v20  ;;  %v2696_v20 = vmov 0.0  }
 0x1b2   :  { %1928 = vtanh.f32 %v660_v46 }
 0x1b3   :  { %1930 = vrcp.f32 %v656_v48 }
 0x1bf   :  { %v1929_v0 = vpop.eup %1928 }
 0x1c0   :  { %v662_v12 = vsub.f32 0.0, %v1929_v0  ;;  %v1931_v32 = vpop.eup %1930 }
 0x1c2   :  { %v663_v1 = vmul.f32 %v1931_v32, %v662_v12 }
 0x1c4   :  { %v2384_v61 = vadd.f32 %v1929_v0, %v663_v1 }
 0x1c6   :  { %v665_v25 = vpack.c.bf16 %v2384_v61, %v2384_v61 }
 0x1c8   :  { %699 = vmatmul.mubr.bf16.vlgmr.msra.gmra.mxu0 %v665_v25  ;;  %1718 = vmatmul.mubr.bf16.vlgmr.msra.gmra.mxu1 %v665_v25 }
 0x1c9   :  { %769 = vmatpush1.bf16.msra.mxu0 %v2172_v36  ;;  %1722 = vmatpush3.bf16.msra.mxu1 %v2192_v45 }
 0x1ca   :  { %770 = vmatprep.subr.bf16.mxu0 %v2175_v37  ;;  %1723 = vmatprep.subr.bf16.mxu1 %v2696_v20 }
 0x1cb   :  { %800 = vmatprep.mubr.bf16.mxu0 %v2697_v31  ;;  %1737 = vmatprep.mubr.msk.bf16.mxu1 %vm2093_vm9, %v2696_v20 }
 0x1cd   :  { %771 = vmatpush1.bf16.msra.mxu0 %v2183_v41  ;;  %1724 = vmatpush3.bf16.msra.mxu1 %v2223_v58 }
 0x1ce   :  { %772 = vmatprep.subr.bf16.mxu0 %v2188_v42  ;;  %1725 = vmatprep.subr.bf16.mxu1 %v2696_v20 }
 0x1d1   :  { %773 = vmatpush1.bf16.msra.mxu0 %v2199_v49  ;;  %1726 = vmatpush3.bf16.msra.mxu1 %v2238_v62 }
 0x1d2   :  { %774 = vmatprep.subr.bf16.mxu0 %v2204_v50  ;;  %1727 = vmatprep.subr.bf16.mxu1 %v2696_v20 }
 0x1d5   :  { %775 = vmatpush1.bf16.msra.mxu0 %v2213_v54  ;;  %1728 = vmatpush3.bf16.msra.mxu1 %v2251_v3 }
 0x1d6   :  { %776 = vmatprep.subr.bf16.mxu0 %v2218_v55  ;;  %1729 = vmatprep.subr.bf16.mxu1 %v2696_v20 }
 0x1d9   :  { %777 = vmatpush1.bf16.msra.mxu0 %v2230_v59  ;;  %1730 = vmatpush3.bf16.msra.mxu1 %v2265_v6 }
 0x1da   :  { %778 = vmatprep.subr.bf16.mxu0 %v2234_v60  ;;  %1731 = vmatprep.subr.bf16.mxu1 %v2696_v20 }
 0x1dd   :  { %779 = vmatpush1.bf16.msra.mxu0 %v2244_v63  ;;  %1732 = vmatpush3.bf16.msra.mxu1 %v2275_v8 }
 0x1de   :  { %780 = vmatprep.subr.bf16.mxu0 %v2247_v2  ;;  %1733 = vmatprep.subr.bf16.mxu1 %v2696_v20 }
 0x1e1   :  { %781 = vmatpush1.bf16.msra.mxu0 %v2259_v4  ;;  %1734 = vmatpush3.bf16.msra.mxu1 %v2283_v9 }
 0x1e2   :  { %782 = vmatprep.subr.bf16.mxu0 %v2262_v5  ;;  %1735 = vmatprep.subr.bf16.mxu1 %v2696_v20 }
 0x1e5   :  { %783 = vmatpush1.bf16.msra.mxu0 %v2271_v7  ;;  %1736 = vmatpush3.bf16.msra.mxu1 %v2291_v10 }
 0x1e6   :  { %870 = vmatprep.subr.bf16.mxu0 %v2165_v30  ;;  %1741 = vmatprep.subr.bf16.mxu1 %v2696_v20 }
 0x288   :  { %v700_v33 = vpop.f32.mrf.mxu0  ;;  %v741_v35 = vpop.f32.mrf.mxu1 }
 0x289   :  { %v701_v48 = vadd.f32 %v700_v33, %v2367_v38  ;;  %v742_v33 = vadd.f32 %v741_v35, %v2381_v47 }
 0x28a   :  { %v702_v29 = vpop.f32.mrf.mxu0  ;;  %v1719_v40 = vpop.f32.mrf.mxu1 }
 0x28b   :  { %v747_v11 = vadd.f32 %v701_v48, %v2329_v13  ;;  %v703_v46 = vadd.f32 %v702_v29, %v2376_v53 }
 0x28c   :  { %v704_v43 = vpop.f32.mrf.mxu0  ;;  %v744_v44 = vpop.f32.mrf.mxu1 }
 0x28d   :  { %v1535_v51 = vmul.f32 -1.442695, %v747_v11  ;;  %v754_v0 = vadd.f32 %v703_v46, %v2331_v14 }
 0x28e   :  { %v705_v52 = vpop.f32.mrf.mxu0  ;;  %v1720_v56 = vpop.f32.mrf.mxu1 }
 0x28f   :  { %1932 = vpow2.f32 %v1535_v51  ;;  %v1536_v12 = vmul.f32 -1.442695, %v754_v0 }
 0x291   :  { %1934 = vpow2.f32 %v1536_v12 }
 0x29c   :  { %v1933_v32 = vpop.eup %1932 }
 0x29d   :  { %v751_v1 = vadd.f32 1.0, %v1933_v32 }
 0x29e   :  { %v1935_v25 = vpop.eup %1934 }
 0x29f   :  { %1936 = vrcp.f32 %v751_v1  ;;  %v758_v11 = vadd.f32 1.0, %v1935_v25 }
 0x2ac   :  { %v1937_v40 = vpop.eup %1936 }
 0x2ad   :  { %v761_v13 = vmul.f32 %v1937_v40, %v742_v33 }
 0x2af   :  { %v762_v48 = vadd.f32 %v2337_v17, %v761_v13 }
 0x2b1   :  { %1938 = vtanh.f32 %v762_v48 }
 0x2b2   :  { %1940 = vrcp.f32 %v758_v11 }
 0x2be   :  { %v1939_v43 = vpop.eup %1938 }
 0x2bf   :  { %v764_v29 = vsub.f32 %v2384_v61, %v1939_v43  ;;  %v1941_v44 = vpop.eup %1940 }
 0x2c1   :  { %v765_v14 = vmul.f32 %v1941_v44, %v764_v29 }
 0x2c3   :  { %v2430_v51 = vadd.f32 %v1939_v43, %v765_v14 }
 0x2c5   :  { %v767_v52 = vpack.c.bf16 %v2430_v51, %v2430_v51 }
 0x2c7   :  { %801 = vmatmul.mubr.bf16.vlgmr.msra.gmra.mxu0 %v767_v52  ;;  %1738 = vmatmul.mubr.bf16.vlgmr.msra.gmra.mxu1 %v767_v52 }
 0x2c8   :  { %871 = vmatpush1.bf16.msra.mxu0 %v2172_v36  ;;  %1742 = vmatpush3.bf16.msra.mxu1 %v2192_v45 }
 0x2c9   :  { %872 = vmatprep.subr.bf16.mxu0 %v2175_v37  ;;  %1743 = vmatprep.subr.bf16.mxu1 %v2696_v20 }
 0x2ca   :  { %902 = vmatprep.mubr.bf16.mxu0 %v2697_v31  ;;  %1757 = vmatprep.mubr.msk.bf16.mxu1 %vm2093_vm9, %v2696_v20 }
 0x2cc   :  { %873 = vmatpush1.bf16.msra.mxu0 %v2183_v41  ;;  %1744 = vmatpush3.bf16.msra.mxu1 %v2223_v58 }
 0x2cd   :  { %874 = vmatprep.subr.bf16.mxu0 %v2188_v42  ;;  %1745 = vmatprep.subr.bf16.mxu1 %v2696_v20 }
 0x2d0   :  { %875 = vmatpush1.bf16.msra.mxu0 %v2199_v49  ;;  %1746 = vmatpush3.bf16.msra.mxu1 %v2238_v62 }
 0x2d1   :  { %876 = vmatprep.subr.bf16.mxu0 %v2204_v50  ;;  %1747 = vmatprep.subr.bf16.mxu1 %v2696_v20 }
 0x2d4   :  { %877 = vmatpush1.bf16.msra.mxu0 %v2213_v54  ;;  %1748 = vmatpush3.bf16.msra.mxu1 %v2251_v3 }
 0x2d5   :  { %878 = vmatprep.subr.bf16.mxu0 %v2218_v55  ;;  %1749 = vmatprep.subr.bf16.mxu1 %v2696_v20 }
 0x2d8   :  { %879 = vmatpush1.bf16.msra.mxu0 %v2230_v59  ;;  %1750 = vmatpush3.bf16.msra.mxu1 %v2265_v6 }
 0x2d9   :  { %880 = vmatprep.subr.bf16.mxu0 %v2234_v60  ;;  %1751 = vmatprep.subr.bf16.mxu1 %v2696_v20 }
 0x2dc   :  { %881 = vmatpush1.bf16.msra.mxu0 %v2244_v63  ;;  %1752 = vmatpush3.bf16.msra.mxu1 %v2275_v8 }
 0x2dd   :  { %882 = vmatprep.subr.bf16.mxu0 %v2247_v2  ;;  %1753 = vmatprep.subr.bf16.mxu1 %v2696_v20 }
 0x2e0   :  { %883 = vmatpush1.bf16.msra.mxu0 %v2259_v4  ;;  %1754 = vmatpush3.bf16.msra.mxu1 %v2283_v9 }
 0x2e1   :  { %884 = vmatprep.subr.bf16.mxu0 %v2262_v5  ;;  %1755 = vmatprep.subr.bf16.mxu1 %v2696_v20 }
 0x2e4   :  { %885 = vmatpush1.bf16.msra.mxu0 %v2271_v7  ;;  %1756 = vmatpush3.bf16.msra.mxu1 %v2291_v10 }
 0x2e5   :  { %972 = vmatprep.subr.bf16.mxu0 %v2165_v30  ;;  %1761 = vmatprep.subr.bf16.mxu1 %v2696_v20 }
 0x387   :  { %v802_v17 = vpop.f32.mrf.mxu0  ;;  %v843_v61 = vpop.f32.mrf.mxu1 }
 0x388   :  { %v803_v35 = vadd.f32 %v802_v17, %v2367_v38  ;;  %v844_v44 = vadd.f32 %v843_v61, %v2381_v47 }
 0x389   :  { %v804_v56 = vpop.f32.mrf.mxu0  ;;  %v1739_v46 = vpop.f32.mrf.mxu1 }
 0x38a   :  { %v849_v0 = vadd.f32 %v803_v35, %v2333_v15  ;;  %v805_v40 = vadd.f32 %v804_v56, %v2376_v53 }
 0x38b   :  { %v806_v12 = vpop.f32.mrf.mxu0  ;;  %v846_v32 = vpop.f32.mrf.mxu1 }
 0x38c   :  { %v1537_v1 = vmul.f32 -1.442695, %v849_v0  ;;  %v856_v13 = vadd.f32 %v805_v40, %v2335_v16 }
 0x38d   :  { %v807_v25 = vpop.f32.mrf.mxu0  ;;  %v1740_v33 = vpop.f32.mrf.mxu1 }
 0x38e   :  { %1942 = vpow2.f32 %v1537_v1  ;;  %v1538_v48 = vmul.f32 -1.442695, %v856_v13 }
 0x390   :  { %1944 = vpow2.f32 %v1538_v48 }
 0x39b   :  { %v1943_v11 = vpop.eup %1942 }
 0x39c   :  { %v853_v43 = vadd.f32 1.0, %v1943_v11 }
 0x39d   :  { %v1945_v29 = vpop.eup %1944 }
 0x39e   :  { %1946 = vrcp.f32 %v853_v43  ;;  %v860_v17 = vadd.f32 1.0, %v1945_v29 }
 0x3ab   :  { %v1947_v14 = vpop.eup %1946 }
 0x3ac   :  { %v863_v15 = vmul.f32 %v1947_v14, %v844_v44 }
 0x3ae   :  { %v864_v52 = vadd.f32 %v863_v15, %v2354_v27 }
 0x3b0   :  { %1948 = vtanh.f32 %v864_v52 }
 0x3b1   :  { %1950 = vrcp.f32 %v860_v17 }
 0x3bd   :  { %v1949_v35 = vpop.eup %1948 }
 0x3be   :  { %v866_v56 = vsub.f32 %v2430_v51, %v1949_v35  ;;  %v1951_v46 = vpop.eup %1950 }
 0x3c0   :  { %v867_v16 = vmul.f32 %v1951_v46, %v866_v56 }
 0x3c2   :  { %v2476_v0 = vadd.f32 %v1949_v35, %v867_v16 }
 0x3c4   :  { %v869_v12 = vpack.c.bf16 %v2476_v0, %v2476_v0 }
 0x3c6   :  { %903 = vmatmul.mubr.bf16.vlgmr.msra.gmra.mxu0 %v869_v12  ;;  %1758 = vmatmul.mubr.bf16.vlgmr.msra.gmra.mxu1 %v869_v12 }
 0x3c7   :  { %973 = vmatpush1.bf16.msra.mxu0 %v2172_v36  ;;  %1762 = vmatpush3.bf16.msra.mxu1 %v2192_v45 }
 0x3c8   :  { %974 = vmatprep.subr.bf16.mxu0 %v2175_v37  ;;  %1763 = vmatprep.subr.bf16.mxu1 %v2696_v20 }
 0x3c9   :  { %1004 = vmatprep.mubr.bf16.mxu0 %v2697_v31  ;;  %1777 = vmatprep.mubr.msk.bf16.mxu1 %vm2093_vm9, %v2696_v20 }
 0x3cb   :  { %975 = vmatpush1.bf16.msra.mxu0 %v2183_v41  ;;  %1764 = vmatpush3.bf16.msra.mxu1 %v2223_v58 }
 0x3cc   :  { %976 = vmatprep.subr.bf16.mxu0 %v2188_v42  ;;  %1765 = vmatprep.subr.bf16.mxu1 %v2696_v20 }
 0x3cf   :  { %977 = vmatpush1.bf16.msra.mxu0 %v2199_v49  ;;  %1766 = vmatpush3.bf16.msra.mxu1 %v2238_v62 }
 0x3d0   :  { %978 = vmatprep.subr.bf16.mxu0 %v2204_v50  ;;  %1767 = vmatprep.subr.bf16.mxu1 %v2696_v20 }
 0x3d3   :  { %979 = vmatpush1.bf16.msra.mxu0 %v2213_v54  ;;  %1768 = vmatpush3.bf16.msra.mxu1 %v2251_v3 }
 0x3d4   :  { %980 = vmatprep.subr.bf16.mxu0 %v2218_v55  ;;  %1769 = vmatprep.subr.bf16.mxu1 %v2696_v20 }
 0x3d7   :  { %981 = vmatpush1.bf16.msra.mxu0 %v2230_v59  ;;  %1770 = vmatpush3.bf16.msra.mxu1 %v2265_v6 }
 0x3d8   :  { %982 = vmatprep.subr.bf16.mxu0 %v2234_v60  ;;  %1771 = vmatprep.subr.bf16.mxu1 %v2696_v20 }
 0x3db   :  { %983 = vmatpush1.bf16.msra.mxu0 %v2244_v63  ;;  %1772 = vmatpush3.bf16.msra.mxu1 %v2275_v8 }
 0x3dc   :  { %984 = vmatprep.subr.bf16.mxu0 %v2247_v2  ;;  %1773 = vmatprep.subr.bf16.mxu1 %v2696_v20 }
 0x3df   :  { %985 = vmatpush1.bf16.msra.mxu0 %v2259_v4  ;;  %1774 = vmatpush3.bf16.msra.mxu1 %v2283_v9 }
 0x3e0   :  { %986 = vmatprep.subr.bf16.mxu0 %v2262_v5  ;;  %1775 = vmatprep.subr.bf16.mxu1 %v2696_v20 }
 0x3e3   :  { %987 = vmatpush1.bf16.msra.mxu0 %v2271_v7  ;;  %1776 = vmatpush3.bf16.msra.mxu1 %v2291_v10 }
 0x3e4   :  { %1074 = vmatprep.subr.bf16.mxu0 %v2165_v30  ;;  %1781 = vmatprep.subr.bf16.mxu1 %v2696_v20 }
 0x486   :  { %v904_v27 = vpop.f32.mrf.mxu0  ;;  %v945_v51 = vpop.f32.mrf.mxu1 }
 0x487   :  { %v905_v61 = vadd.f32 %v904_v27, %v2367_v38  ;;  %v946_v17 = vadd.f32 %v945_v51, %v2381_v47 }
 0x488   :  { %v906_v32 = vpop.f32.mrf.mxu0  ;;  %v1759_v1 = vpop.f32.mrf.mxu1 }
 0x489   :  { %v951_v25 = vadd.f32 %v905_v61, %v2339_v18  ;;  %v907_v43 = vadd.f32 %v906_v32, %v2376_v53 }
 0x48a   :  { %v908_v33 = vpop.f32.mrf.mxu0  ;;  %v948_v40 = vpop.f32.mrf.mxu1 }
 0x48b   :  { %v1539_v13 = vmul.f32 -1.442695, %v951_v25  ;;  %v958_v29 = vadd.f32 %v907_v43, %v2341_v19 }
 0x48c   :  { %v909_v48 = vpop.f32.mrf.mxu0  ;;  %v1760_v11 = vpop.f32.mrf.mxu1 }
 0x48d   :  { %1952 = vpow2.f32 %v1539_v13  ;;  %v1540_v44 = vmul.f32 -1.442695, %v958_v29 }
 0x48f   :  { %1954 = vpow2.f32 %v1540_v44 }
 0x49a   :  { %v1953_v14 = vpop.eup %1952 }
 0x49b   :  { %v955_v15 = vadd.f32 1.0, %v1953_v14 }
 0x49c   :  { %v1955_v52 = vpop.eup %1954 }
 0x49d   :  { %1956 = vrcp.f32 %v955_v15  ;;  %v962_v46 = vadd.f32 1.0, %v1955_v52 }
 0x4aa   :  { %v1957_v35 = vpop.eup %1956 }
 0x4ab   :  { %v965_v18 = vmul.f32 %v1957_v35, %v946_v17 }
 0x4ad   :  { %v966_v56 = vadd.f32 %v2347_v23, %v965_v18 }
 0x4af   :  { %1958 = vtanh.f32 %v966_v56 }
 0x4b0   :  { %1960 = vrcp.f32 %v962_v46 }
 0x4bc   :  { %v1959_v16 = vpop.eup %1958 }
 0x4bd   :  { %v968_v12 = vsub.f32 %v2476_v0, %v1959_v16  ;;  %v1961_v27 = vpop.eup %1960 }
 0x4bf   :  { %v969_v19 = vmul.f32 %v1961_v27, %v968_v12 }
 0x4c1   :  { %v2522_v61 = vadd.f32 %v1959_v16, %v969_v19 }
 0x4c3   :  { %v971_v32 = vpack.c.bf16 %v2522_v61, %v2522_v61 }
 0x4c5   :  { %1005 = vmatmul.mubr.bf16.vlgmr.msra.gmra.mxu0 %v971_v32  ;;  %1778 = vmatmul.mubr.bf16.vlgmr.msra.gmra.mxu1 %v971_v32 }
 0x4c6   :  { %1075 = vmatpush1.bf16.msra.mxu0 %v2172_v36  ;;  %1782 = vmatpush3.bf16.msra.mxu1 %v2192_v45 }
 0x4c7   :  { %1076 = vmatprep.subr.bf16.mxu0 %v2175_v37  ;;  %1783 = vmatprep.subr.bf16.mxu1 %v2696_v20 }
 0x4c8   :  { %1106 = vmatprep.mubr.bf16.mxu0 %v2697_v31  ;;  %1797 = vmatprep.mubr.msk.bf16.mxu1 %vm2093_vm9, %v2696_v20 }
 0x4ca   :  { %1077 = vmatpush1.bf16.msra.mxu0 %v2183_v41  ;;  %1784 = vmatpush3.bf16.msra.mxu1 %v2223_v58 }
 0x4cb   :  { %1078 = vmatprep.subr.bf16.mxu0 %v2188_v42  ;;  %1785 = vmatprep.subr.bf16.mxu1 %v2696_v20 }
 0x4ce   :  { %1079 = vmatpush1.bf16.msra.mxu0 %v2199_v49  ;;  %1786 = vmatpush3.bf16.msra.mxu1 %v2238_v62 }
 0x4cf   :  { %1080 = vmatprep.subr.bf16.mxu0 %v2204_v50  ;;  %1787 = vmatprep.subr.bf16.mxu1 %v2696_v20 }
 0x4d2   :  { %1081 = vmatpush1.bf16.msra.mxu0 %v2213_v54  ;;  %1788 = vmatpush3.bf16.msra.mxu1 %v2251_v3 }
 0x4d3   :  { %1082 = vmatprep.subr.bf16.mxu0 %v2218_v55  ;;  %1789 = vmatprep.subr.bf16.mxu1 %v2696_v20 }
 0x4d6   :  { %1083 = vmatpush1.bf16.msra.mxu0 %v2230_v59  ;;  %1790 = vmatpush3.bf16.msra.mxu1 %v2265_v6 }
 0x4d7   :  { %1084 = vmatprep.subr.bf16.mxu0 %v2234_v60  ;;  %1791 = vmatprep.subr.bf16.mxu1 %v2696_v20 }
 0x4da   :  { %1085 = vmatpush1.bf16.msra.mxu0 %v2244_v63  ;;  %1792 = vmatpush3.bf16.msra.mxu1 %v2275_v8 }
 0x4db   :  { %1086 = vmatprep.subr.bf16.mxu0 %v2247_v2  ;;  %1793 = vmatprep.subr.bf16.mxu1 %v2696_v20 }
 0x4de   :  { %1087 = vmatpush1.bf16.msra.mxu0 %v2259_v4  ;;  %1794 = vmatpush3.bf16.msra.mxu1 %v2283_v9 }
 0x4df   :  { %1088 = vmatprep.subr.bf16.mxu0 %v2262_v5  ;;  %1795 = vmatprep.subr.bf16.mxu1 %v2696_v20 }
 0x4e2   :  { %1089 = vmatpush1.bf16.msra.mxu0 %v2271_v7  ;;  %1796 = vmatpush3.bf16.msra.mxu1 %v2291_v10 }
 0x4e3   :  { %1176 = vmatprep.subr.bf16.mxu0 %v2165_v30  ;;  %1801 = vmatprep.subr.bf16.mxu1 %v2696_v20 }
 0x585   :  { %v1006_v23 = vpop.f32.mrf.mxu0  ;;  %v1047_v0 = vpop.f32.mrf.mxu1 }
 0x586   :  { %v1007_v51 = vadd.f32 %v1006_v23, %v2367_v38  ;;  %v1048_v17 = vadd.f32 %v1047_v0, %v2381_v47 }
 0x587   :  { %v1008_v1 = vpop.f32.mrf.mxu0  ;;  %v1779_v25 = vpop.f32.mrf.mxu1 }
 0x588   :  { %v1053_v33 = vadd.f32 %v1007_v51, %v2343_v21  ;;  %v1009_v29 = vadd.f32 %v1008_v1, %v2376_v53 }
 0x589   :  { %v1010_v40 = vpop.f32.mrf.mxu0  ;;  %v1050_v13 = vpop.f32.mrf.mxu1 }
 0x58a   :  { %v1541_v48 = vmul.f32 -1.442695, %v1053_v33  ;;  %v1060_v30 = vadd.f32 %v1009_v29, %v2345_v22 }
 0x58b   :  { %v1011_v11 = vpop.f32.mrf.mxu0  ;;  %v1780_v43 = vpop.f32.mrf.mxu1 }
 0x58c   :  { %1962 = vpow2.f32 %v1541_v48  ;;  %v1542_v44 = vmul.f32 -1.442695, %v1060_v30 }
 0x58e   :  { %1964 = vpow2.f32 %v1542_v44  ;;  %v2007_v44 = vld [vmem:[#allocation4 + $0xa8] ss:$12 sps:$4 sm:$0xff]  }
 0x599   :  { %v1963_v14 = vpop.eup %1962 }
 0x59a   :  { %v1057_v15 = vadd.f32 1.0, %v1963_v14  ;;  %v2008_v14 = vld [vmem:[#allocation4 + $0xb0] ss:$12 sps:$4 sm:$0xff]  }
 0x59b   :  { %v1965_v52 = vpop.eup %1964 }
 0x59c   :  { %1966 = vrcp.f32 %v1057_v15  ;;  %v1064_v56 = vadd.f32 1.0, %v1965_v52  ;;  %v2010_v15 = vld [vmem:[#allocation4 + $0x90] ss:$12 sps:$4 sm:$0xff]  }
 0x59d   :  { %v2011_v52 = vld [vmem:[#allocation4 + $0x7c] ss:$12 sps:$4 sm:$0xff]  }
 0x5a9   :  { %v1967_v35 = vpop.eup %1966 }
 0x5aa   :  { %v1067_v21 = vmul.f32 %v1967_v35, %v1048_v17  ;;  %v2012_v17 = vld [vmem:[#allocation4 + $0x78] ss:$12 sps:$4 sm:$0xff]  }
 0x5ab   :  { %v2013_v35 = vld [vmem:[#allocation4 + $0x64] ss:$12 sps:$4 sm:$0xff]  }
 0x5ac   :  { %v1068_v18 = vadd.f32 %v1067_v21, %v2371_v39  ;;  %v2015_v21 = vld [vmem:[#allocation4 + $0x4c] ss:$12 sps:$4 sm:$0xff]  }
 0x5ae   :  { %1968 = vtanh.f32 %v1068_v18  ;;  %v2017_v18 = vld [vmem:[#allocation4 + $0x34] ss:$12 sps:$4 sm:$0xff]  }
 0x5af   :  { %1970 = vrcp.f32 %v1064_v56 }
 0x5bb   :  { %v1969_v46 = vpop.eup %1968 }
 0x5bc   :  { %v1070_v16 = vsub.f32 %v2522_v61, %v1969_v46  ;;  %v1971_v12 = vpop.eup %1970 }
 0x5be   :  { %v1071_v22 = vmul.f32 %v1971_v12, %v1070_v16  ;;  %v2698_v16 = vld [vmem:[#allocation9_spill] sm:$0xff] }
 0x5c0   :  { %v2568_v27 = vadd.f32 %v1969_v46, %v1071_v22 }
 0x5c2   :  { %v1073_v19 = vpack.c.bf16 %v2568_v27, %v2568_v27 }
 0x5c4   :  { %1107 = vmatmul.mubr.bf16.vlgmr.msra.gmra.mxu0 %v1073_v19  ;;  %1798 = vmatmul.mubr.bf16.vlgmr.msra.gmra.mxu1 %v1073_v19 }
 0x5c5   :  { %1177 = vmatpush1.bf16.msra.mxu0 %v2172_v36  ;;  %1802 = vmatpush3.bf16.msra.mxu1 %v2192_v45  ;;  %v2006_v36 = vld [vmem:[#allocation4 + $0xac] ss:$12 sps:$4 sm:$0xff]  }
 0x5c6   :  { %1178 = vmatprep.subr.bf16.mxu0 %v2175_v37  ;;  %1803 = vmatprep.subr.bf16.mxu1 %v2696_v20 }
 0x5c7   :  { %1208 = vmatprep.mubr.bf16.mxu0 %v2697_v31  ;;  %1817 = vmatprep.mubr.msk.bf16.mxu1 %vm2093_vm9, %v2696_v20 }
 0x5c9   :  { %1179 = vmatpush1.bf16.msra.mxu0 %v2183_v41  ;;  %1804 = vmatpush3.bf16.msra.mxu1 %v2223_v58 }
 0x5ca   :  { %1180 = vmatprep.subr.bf16.mxu0 %v2188_v42  ;;  %1805 = vmatprep.subr.bf16.mxu1 %v2696_v20 }
 0x5cd   :  { %1181 = vmatpush1.bf16.msra.mxu0 %v2199_v49  ;;  %1806 = vmatpush3.bf16.msra.mxu1 %v2238_v62 }
 0x5ce   :  { %1182 = vmatprep.subr.bf16.mxu0 %v2204_v50  ;;  %1807 = vmatprep.subr.bf16.mxu1 %v2696_v20 }
 0x5d1   :  { %1183 = vmatpush1.bf16.msra.mxu0 %v2213_v54  ;;  %1808 = vmatpush3.bf16.msra.mxu1 %v2251_v3 }
 0x5d2   :  { %1184 = vmatprep.subr.bf16.mxu0 %v2218_v55  ;;  %1809 = vmatprep.subr.bf16.mxu1 %v2696_v20 }
 0x5d5   :  { %1185 = vmatpush1.bf16.msra.mxu0 %v2230_v59  ;;  %1810 = vmatpush3.bf16.msra.mxu1 %v2265_v6 }
 0x5d6   :  { %1186 = vmatprep.subr.bf16.mxu0 %v2234_v60  ;;  %1811 = vmatprep.subr.bf16.mxu1 %v2696_v20 }
 0x5d9   :  { %1187 = vmatpush1.bf16.msra.mxu0 %v2244_v63  ;;  %1812 = vmatpush3.bf16.msra.mxu1 %v2275_v8 }
 0x5da   :  { %1188 = vmatprep.subr.bf16.mxu0 %v2247_v2  ;;  %1813 = vmatprep.subr.bf16.mxu1 %v2696_v20 }
 0x5dd   :  { %1189 = vmatpush1.bf16.msra.mxu0 %v2259_v4  ;;  %1814 = vmatpush3.bf16.msra.mxu1 %v2283_v9 }
 0x5de   :  { %1190 = vmatprep.subr.bf16.mxu0 %v2262_v5  ;;  %1815 = vmatprep.subr.bf16.mxu1 %v2696_v20 }
 0x5e1   :  { %1191 = vmatpush1.bf16.msra.mxu0 %v2271_v7  ;;  %1816 = vmatpush3.bf16.msra.mxu1 %v2291_v10 }
 0x5e2   :  { %1278 = vmatprep.subr.bf16.mxu0 %v2006_v36  ;;  %1821 = vmatprep.subr.bf16.mxu1 %v2696_v20 }
 0x684   :  { %v1108_v37 = vpop.f32.mrf.mxu0  ;;  %v1149_v41 = vpop.f32.mrf.mxu1 }
 0x685   :  { %v1109_v42 = vadd.f32 %v1108_v37, %v2367_v38  ;;  %v1150_v25 = vadd.f32 %v1149_v41, %v2381_v47 }
 0x686   :  { %v1110_v45 = vpop.f32.mrf.mxu0  ;;  %v1799_v49 = vpop.f32.mrf.mxu1 }
 0x687   :  { %v1155_v50 = vadd.f32 %v1109_v42, %v2349_v24  ;;  %v1111_v61 = vadd.f32 %v1110_v45, %v2376_v53 }
 0x688   :  { %v1112_v54 = vpop.f32.mrf.mxu0  ;;  %v1152_v55 = vpop.f32.mrf.mxu1 }
 0x689   :  { %v1543_v59 = vmul.f32 -1.442695, %v1155_v50  ;;  %v1162_v32 = vadd.f32 %v1111_v61, %v2352_v26  ;;  %v1391_v61 = vld [vmem:[#allocation6 + $0x60] sm:$0xff] }
 0x68a   :  { %v1113_v60 = vpop.f32.mrf.mxu0  ;;  %v1800_v39 = vpop.f32.mrf.mxu1 }
 0x68b   :  { %1972 = vpow2.f32 %v1543_v59  ;;  %v1544_v23 = vmul.f32 -1.442695, %v1162_v32  ;;  %v1394_v60 = vld [vmem:[#allocation6 + $0x78] sm:$0xff]  ;;  %v1392_v39 = vld [vmem:[#allocation6 + $0x68] sm:$0xff] }
 0x68c   :  { %v1390_v32 = vld [vmem:[#allocation6 + $0x58] sm:$0xff] }
 0x68d   :  { %1974 = vpow2.f32 %v1544_v23  ;;  %v1389_v23 = vld [vmem:[#allocation6 + $0x50] sm:$0xff] }
 0x698   :  { %v1973_v0 = vpop.eup %1972 }
 0x699   :  { %v1159_v51 = vadd.f32 1.0, %v1973_v0  ;;  %v1388_v0 = vld [vmem:[#allocation6 + $0x48] sm:$0xff] }
 0x69a   :  { %v1975_v1 = vpop.eup %1974 }
 0x69b   :  { %1976 = vrcp.f32 %v1159_v51  ;;  %v1166_v13 = vadd.f32 1.0, %v1975_v1  ;;  %v1387_v51 = vld [vmem:[#allocation6 + $0x40] sm:$0xff]  ;;  %v1386_v1 = vld [vmem:[#allocation6 + $0x38] sm:$0xff] }
 0x6a8   :  { %v1977_v33 = vpop.eup %1976 }
 0x6a9   :  { %v1169_v24 = vmul.f32 %v1977_v33, %v1150_v25  ;;  %v1385_v25 = vld [vmem:[#allocation6 + $0x30] sm:$0xff]  ;;  %v1384_v33 = vld [vmem:[#allocation6 + $0x28] sm:$0xff] }
 0x6ab   :  { %v1170_v40 = vadd.f32 %v2363_v34, %v1169_v24  ;;  %v2009_v34 = vld [vmem:[#allocation4 + $0x94] ss:$12 sps:$4 sm:$0xff]  }
 0x6ac   :  { %v1383_v24 = vld [vmem:[#allocation6 + $0x20] sm:$0xff] }
 0x6ad   :  { %1978 = vtanh.f32 %v1170_v40  ;;  %v1382_v40 = vld [vmem:[#allocation6 + $0x18] sm:$0xff] }
 0x6ae   :  { %1980 = vrcp.f32 %v1166_v13  ;;  %v1381_v13 = vld [vmem:[#allocation6 + $0x10] sm:$0xff] }
 0x6ba   :  { %v1979_v48 = vpop.eup %1978 }
 0x6bb   :  { %v1172_v11 = vsub.f32 %v2568_v27, %v1979_v48  ;;  %v1981_v43 = vpop.eup %1980 }
 0x6bd   :  { %v1173_v26 = vmul.f32 %v1981_v43, %v1172_v11  ;;  %v1379_v11 = vld [vmem:[#allocation6] sm:$0xff] }
 0x6bf   :  { %v2613_v29 = vadd.f32 %v1979_v48, %v1173_v26  ;;  %v1380_v48 = vld [vmem:[#allocation6 + $0x8] sm:$0xff] }
 0x6c1   :  { %v1175_v30 = vpack.c.bf16 %v2613_v29, %v2613_v29 }
 0x6c3   :  { %1209 = vmatmul.mubr.bf16.vlgmr.msra.gmra.mxu0 %v1175_v30  ;;  %1818 = vmatmul.mubr.bf16.vlgmr.msra.gmra.mxu1 %v1175_v30 }
 0x6c4   :  { %1279 = vmatpush1.bf16.msra.mxu0 %v2007_v44  ;;  %1822 = vmatpush3.bf16.msra.mxu1 %v2008_v14  ;;  %v2699_v14 = vld [vmem:[#allocation10_spill] sm:$0xff] }
 0x6c5   :  { %1280 = vmatprep.subr.bf16.mxu0 %v2009_v34  ;;  %1823 = vmatprep.subr.bf16.mxu1 %v2696_v20 }
 0x6c6   :  { %1310 = vmatprep.mubr.bf16.mxu0 %v2697_v31  ;;  %1837 = vmatprep.mubr.msk.bf16.mxu1 %vm2093_vm9, %v2696_v20  ;;  %v2014_v31 = vld [vmem:[#allocation4 + $0x60] ss:$12 sps:$4 sm:$0xff]  }
 0x6c8   :  { %1281 = vmatpush1.bf16.msra.mxu0 %v2010_v15  ;;  %1824 = vmatpush3.bf16.msra.mxu1 %v2223_v58  ;;  %v2016_v58 = vld [vmem:[#allocation4 + $0x48] ss:$12 sps:$4 sm:$0xff]  }
 0x6c9   :  { %1282 = vmatprep.subr.bf16.mxu0 %v2011_v52  ;;  %1825 = vmatprep.subr.bf16.mxu1 %v2696_v20 }
 0x6cc   :  { %1283 = vmatpush1.bf16.msra.mxu0 %v2012_v17  ;;  %1826 = vmatpush3.bf16.msra.mxu1 %v2238_v62 }
 0x6cd   :  { %1284 = vmatprep.subr.bf16.mxu0 %v2013_v35  ;;  %1827 = vmatprep.subr.bf16.mxu1 %v2696_v20 }
 0x6d0   :  { %1285 = vmatpush1.bf16.msra.mxu0 %v2014_v31  ;;  %1828 = vmatpush3.bf16.msra.mxu1 %v2251_v3 }
 0x6d1   :  { %1286 = vmatprep.subr.bf16.mxu0 %v2015_v21  ;;  %1829 = vmatprep.subr.bf16.mxu1 %v2696_v20 }
 0x6d4   :  { %1287 = vmatpush1.bf16.msra.mxu0 %v2016_v58  ;;  %1830 = vmatpush3.bf16.msra.mxu1 %v2265_v6  ;;  %v2700_v58 = vld [vmem:[#allocation11_spill] sm:$0xff] }
 0x6d5   :  { %1288 = vmatprep.subr.bf16.mxu0 %v2017_v18  ;;  %1831 = vmatprep.subr.bf16.mxu1 %v2696_v20 }
 0x6d8   :  { %1289 = vmatpush1.bf16.msra.mxu0 %v2244_v63  ;;  %1832 = vmatpush3.bf16.msra.mxu1 %v2275_v8 }
 0x6d9   :  { %1290 = vmatprep.subr.bf16.mxu0 %v2247_v2  ;;  %1833 = vmatprep.subr.bf16.mxu1 %v2696_v20 }
 0x6dc   :  { %1291 = vmatpush1.bf16.msra.mxu0 %v2259_v4  ;;  %1834 = vmatpush3.bf16.msra.mxu1 %v2283_v9 }
 0x6dd   :  { %1292 = vmatprep.subr.bf16.mxu0 %v2262_v5  ;;  %1835 = vmatprep.subr.bf16.mxu1 %v2696_v20 }
 0x6e0   :  { %1293 = vmatpush1.bf16.msra.mxu0 %v2271_v7  ;;  %1836 = vmatpush3.bf16.msra.mxu1 %v2291_v10 }
 0x6e1   :  { %1841 = vmatprep.subr.mxu0 %v2696_v20 }
 0x783   :  { %v1210_v62 = vpop.f32.mrf.mxu0  ;;  %v1251_v63 = vpop.f32.mrf.mxu1 }
 0x784   :  { %v1211_v2 = vadd.f32 %v1210_v62, %v2367_v38  ;;  %v1252_v36 = vadd.f32 %v1251_v63, %v2381_v47 }
 0x785   :  { %v1212_v3 = vpop.f32.mrf.mxu0  ;;  %v1819_v6 = vpop.f32.mrf.mxu1 }
 0x786   :  { %v1257_v4 = vadd.f32 %v1211_v2, %v2356_v28  ;;  %v1213_v7 = vadd.f32 %v1212_v3, %v2376_v53 }
 0x787   :  { %v1214_v8 = vpop.f32.mrf.mxu0  ;;  %v1254_v9 = vpop.f32.mrf.mxu1 }
 0x788   :  { %v1545_v56 = vmul.f32 -1.442695, %v1257_v4  ;;  %v1264_v10 = vadd.f32 %v1213_v7, %v2698_v16  ;;  %v2701_v4 = vld [vmem:[#allocation12_spill] sm:$0xff] }
 0x789   :  { %v1215_v5 = vpop.f32.mrf.mxu0  ;;  %v1820_v46 = vpop.f32.mrf.mxu1  ;;  %v1549_v16 = vld [vmem:[%s2686_s5] ss:$0 sm:$0xff] }
 0x78a   :  { %1982 = vpow2.f32 %v1545_v56  ;;  %v1546_v12 = vmul.f32 -1.442695, %v1264_v10 }
 0x78c   :  { %1984 = vpow2.f32 %v1546_v12 }
 0x797   :  { %v1983_v22 = vpop.eup %1982 }
 0x798   :  { %v1261_v27 = vadd.f32 1.0, %v1983_v22 }
 0x799   :  { %v1985_v19 = vpop.eup %1984 }
 0x79a   :  { %1986 = vrcp.f32 %v1261_v27  ;;  %v1268_v42 = vadd.f32 1.0, %v1985_v19 }
 0x7a7   :  { %v1987_v37 = vpop.eup %1986 }
 0x7a8   :  { %v1271_v28 = vmul.f32 %v1987_v37, %v1252_v36 }
 0x7aa   :  { %v1272_v41 = vadd.f32 %v1271_v28, %v2378_v57  ;;  %v1393_v57 = vld [vmem:[#allocation6 + $0x70] sm:$0xff] }
 0x7ac   :  { %1988 = vtanh.f32 %v1272_v41 }
 0x7ad   :  { %1990 = vrcp.f32 %v1268_v42 }
 0x7b9   :  { %v1989_v45 = vpop.eup %1988 }
 0x7ba   :  { %v1274_v49 = vsub.f32 %v2613_v29, %v1989_v45  ;;  %v1991_v50 = vpop.eup %1990 }
 0x7bc   :  { %v1275_v54 = vmul.f32 %v1991_v50, %v1274_v49 }
 0x7be   :  { %v2647_v55 = vadd.f32 %v1989_v45, %v1275_v54 }
 0x7c0   :  { %v1277_v59 = vpack.c.bf16 %v2647_v55, %v2647_v55 }
 0x7c2   :  { %1311 = vmatmul.mubr.bf16.vlgmr.msra.gmra.mxu0 %v1277_v59  ;;  %1838 = vmatmul.mubr.bf16.vlgmr.msra.gmra.mxu1 %v1277_v59 }
 0x7c3   :  { %1873 = vmatprep.mubr.msk.f32.mxu0 %vm2093_vm9, %v2696_v20  ;;  %1842 = vmatpush3.msra.mxu0 %v1394_v60 }
 0x7c4   :  { %1843 = vmatprep.subr.mxu0 %v2696_v20 }
 0x7c5   :  { %1844 = vmatpush3.msra.mxu0 %v1393_v57 }
 0x7c6   :  { %1845 = vmatprep.subr.mxu0 %v2696_v20 }
 0x7c7   :  { %1846 = vmatpush3.msra.mxu0 %v1392_v39 }
 0x7c8   :  { %1847 = vmatprep.subr.mxu0 %v2696_v20 }
 0x7c9   :  { %1848 = vmatpush3.msra.mxu0 %v1391_v61 }
 0x7ca   :  { %1849 = vmatprep.subr.mxu0 %v2696_v20 }
 0x7cb   :  { %1850 = vmatpush3.msra.mxu0 %v1390_v32 }
 0x7cc   :  { %1851 = vmatprep.subr.mxu0 %v2696_v20 }
 0x7cd   :  { %1852 = vmatpush3.msra.mxu0 %v1389_v23 }
 0x7ce   :  { %1853 = vmatprep.subr.mxu0 %v2696_v20 }
 0x7cf   :  { %1854 = vmatpush3.msra.mxu0 %v1388_v0 }
 0x7d0   :  { %1855 = vmatprep.subr.mxu0 %v2696_v20 }
 0x7d1   :  { %1856 = vmatpush3.msra.mxu0 %v1387_v51 }
 0x7d2   :  { %1857 = vmatprep.subr.mxu0 %v2696_v20 }
 0x7d3   :  { %1858 = vmatpush3.msra.mxu0 %v1386_v1 }
 0x7d4   :  { %1859 = vmatprep.subr.mxu0 %v2696_v20 }
 0x7d5   :  { %1860 = vmatpush3.msra.mxu0 %v1385_v25 }
 0x7d6   :  { %1861 = vmatprep.subr.mxu0 %v2696_v20 }
 0x7d7   :  { %1862 = vmatpush3.msra.mxu0 %v1384_v33 }
 0x7d8   :  { %1863 = vmatprep.subr.mxu0 %v2696_v20 }
 0x7d9   :  { %1864 = vmatpush3.msra.mxu0 %v1383_v24 }
 0x7da   :  { %1865 = vmatprep.subr.mxu0 %v2696_v20 }
 0x7db   :  { %1866 = vmatpush3.msra.mxu0 %v1382_v40 }
 0x7dc   :  { %1867 = vmatprep.subr.mxu0 %v2696_v20 }
 0x7dd   :  { %1868 = vmatpush3.msra.mxu0 %v1381_v13 }
 0x7de   :  { %1869 = vmatprep.subr.mxu0 %v2696_v20 }
 0x7df   :  { %1870 = vmatpush3.msra.mxu0 %v1380_v48 }
 0x7e0   :  { %1871 = vmatprep.subr.mxu0 %v2696_v20 }
 0x7e1   :  { %1872 = vmatpush3.msra.mxu0 %v1379_v11 }
 0x882   :  { %v1312_v43 = vpop.f32.mrf.mxu0  ;;  %v1353_v26 = vpop.f32.mrf.mxu1 }
 0x883   :  { %v1313_v29 = vadd.f32 %v1312_v43, %v2367_v38  ;;  %v1354_v2 = vadd.f32 %v1353_v26, %v2381_v47 }
 0x884   :  { %v1314_v30 = vpop.f32.mrf.mxu0  ;;  %v1839_v44 = vpop.f32.mrf.mxu1 }
 0x885   :  { %v1359_v34 = vadd.f32 %v1313_v29, %v2699_v14  ;;  %v1315_v21 = vadd.f32 %v1314_v30, %v2376_v53 }
 0x886   :  { %v1316_v15 = vpop.f32.mrf.mxu0  ;;  %v1356_v52 = vpop.f32.mrf.mxu1 }
 0x887   :  { %v1547_v17 = vmul.f32 -1.442695, %v1359_v34  ;;  %v1366_v18 = vadd.f32 %v1315_v21, %v2700_v58 }
 0x888   :  { %v1317_v35 = vpop.f32.mrf.mxu0  ;;  %v1840_v31 = vpop.f32.mrf.mxu1 }
 0x889   :  { %1992 = vpow2.f32 %v1547_v17  ;;  %v1548_v20 = vmul.f32 -1.442695, %v1366_v18 }
 0x88b   :  { %1994 = vpow2.f32 %v1548_v20 }
 0x896   :  { %v1993_v62 = vpop.eup %1992 }
 0x897   :  { %v1363_v63 = vadd.f32 1.0, %v1993_v62 }
 0x898   :  { %v1995_v38 = vpop.eup %1994 }
 0x899   :  { %1996 = vrcp.f32 %v1363_v63  ;;  %v1370_v9 = vadd.f32 1.0, %v1995_v38 }
 0x8a6   :  { %v1997_v3 = vpop.eup %1996 }
 0x8a7   :  { %v1373_v6 = vmul.f32 %v1997_v3, %v1354_v2 }
 0x8a9   :  { %v1374_v8 = vadd.f32 %v2701_v4, %v1373_v6 }
 0x8ab   :  { %1998 = vtanh.f32 %v1374_v8 }
 0x8ac   :  { %2000 = vrcp.f32 %v1370_v9 }
 0x8b8   :  { %v1999_v56 = vpop.eup %1998 }
 0x8b9   :  { %v1376_v53 = vsub.f32 %v2647_v55, %v1999_v56  ;;  %v2001_v5 = vpop.eup %2000 }
 0x8bb   :  { %v1377_v46 = vmul.f32 %v2001_v5, %v1376_v53 }
 0x8bd   :  { %v1378_v7 = vadd.f32 %v1999_v56, %v1377_v46 }
 0x8bf   :  { %1874 = vmatmul.mubr.f32.vlgmr.msra.gmra.mxu0 %v1378_v7 }
 0x97f   :  { %v1468_v10 = vpop.f32.mrf.mxu0 }
 0x980   :  { %v1469_v47 = vadd.f32 %v1549_v16, %v1468_v10 }
 0x981   :  { %v1875_v12 = vpop.f32.mrf.mxu0 }
 0x982   :  { %v1550_v22 = vmul.f32 -1.442695, %v1469_v47 }
 0x984   :  { %2002 = vpow2.f32 %v1550_v22 }
 0x991   :  { %v2003_v27 = vpop.eup %2002 }
 0x992   :  { %v1475_v19 = vadd.f32 1.0, %v2003_v27 }
 0x994   :  { %2004 = vrcp.f32 %v1475_v19 }
 0x9a1   :  { %v2005_v36 = vpop.eup %2004 }
 0x9a2   :  { %1478 = vst [vmem:[%s2687_s6] sm:$0xff] %v2005_v36 }
 0x9a3   :  { %1483 = vsyncpa [#allocation3], 1 }
 0x9a4   :  { %1484 = vsyncpa [#allocation5], 1 }

</bundles_post_ra>
